<compile_context>
chip_gen: v5e
topology: v5e:2x2
jax: 0.10.0
libtpu: 0.0.40
codegen_flags: <defaults>
</compile_context>

<pallas_src>
import jax
import jax.numpy as jnp
from jax.experimental import pallas as pl
from jax.experimental.pallas import tpu as pltpu


def _round_up(n, m):
    return ((n + m - 1) // m) * m


def news_cnn_kernel(x_ref,     # (Lp, TB, E)    bf16  time-major embedded tokens (time-padded)
                    w_ref,     # (Kmax, E, Fp)  bf16  fused conv weight (zero-filled taps/cols)
                    b_ref,     # (1, Fp)        f32   fused conv bias (zero in padded cols)
                    mask_ref,  # (Lout, 1, Fp)  f32   1.0 where time step valid for that column
                    fcw_ref,   # (Fp, Cp)       f32   fc weight, transposed + zero-padded
                    fcb_ref,   # (1, Cp)        f32   fc bias, zero-padded
                    out_ref):  # (TB, Cp)       f32   logits (padded class columns are zero)
    lp, tb, e = x_ref.shape
    k_max, _, fp = w_ref.shape
    lout = lp - k_max + 1                      # == seq_len - min(filter_sizes) + 1

    x = x_ref[...]                             # (Lp, TB, E) bf16

    # Fused multi-width conv: k_max shifted (Lout*TB, E) x (E, Fp) MXU matmuls, f32 accumulate.
    # TODO(synk): a single im2col matmul (K = Kmax*E) needs a lane concat at non-128 offsets
    # when E < 128; keep the accumulate chain (MXU feeds one f32 accumulator per tap).
    acc = jnp.dot(x[0:lout].reshape(lout * tb, e), w_ref[0],
                  preferred_element_type=jnp.float32)
    for j in range(1, k_max):                  # static unroll, k_max == 5
        acc = acc + jnp.dot(x[j:j + lout].reshape(lout * tb, e), w_ref[j],
                            preferred_element_type=jnp.float32)

    acc = jnp.maximum(acc + b_ref[...], 0.0)   # bias + ReLU (f32), (Lout*TB, Fp)

    # Mask time steps invalid for the column's filter width (and padded filter columns), then
    # max-pool over time.  NOTE: masking with 0 is only neutral because it happens AFTER ReLU
    # (all surviving values are >= 0); do not move it before the activation.
    acc = acc.reshape(lout, tb, fp) * mask_ref[...]
    feats = jnp.max(acc, axis=0)               # (TB, Fp), lane-dense

    # Dropout is identity at inference; FC fused into the same kernel, lane-dense Cp output.
    out_ref[...] = (jnp.dot(feats, fcw_ref[...], preferred_element_type=jnp.float32)
                    + fcb_ref[...])


def pack_params(embedding, conv_ws, conv_bs, fc_w, fc_b, filter_sizes, num_filters):
    """Fuse PyTorch-layout weights into the kernel layout (128-lane padded, bf16 conv path)."""
    k_max = max(filter_sizes)
    embed_dim = embedding.shape[1]
    total_f = int(sum(num_filters))
    num_classes = fc_w.shape[0]
    f_pad = _round_up(total_f, 128)
    c_pad = _round_up(num_classes, 128)

    w_fused = jnp.zeros((k_max, embed_dim, f_pad), jnp.bfloat16)
    col = 0
    for k, f, w in zip(filter_sizes, num_filters, conv_ws):       # w: (F, E, k) torch layout
        w_kef = jnp.transpose(w, (2, 1, 0)).astype(jnp.bfloat16)  # (k, E, F)
        w_fused = w_fused.at[:k, :, col:col + f].set(w_kef)       # taps >= k / pad cols stay 0
        col += f
    b_fused = jnp.zeros((1, f_pad), jnp.float32)
    b_fused = b_fused.at[0, :total_f].set(jnp.concatenate(conv_bs).astype(jnp.float32))
    fc_w_p = jnp.zeros((f_pad, c_pad), jnp.float32)
    fc_w_p = fc_w_p.at[:total_f, :num_classes].set(jnp.transpose(fc_w).astype(jnp.float32))
    fc_b_p = jnp.zeros((1, c_pad), jnp.float32)
    fc_b_p = fc_b_p.at[0, :num_classes].set(fc_b.astype(jnp.float32))
    return {
        "embedding": embedding.astype(jnp.bfloat16),   # (V, E), gathered OUTSIDE the kernel
        "conv_w": w_fused,                             # (Kmax, E, Fp) bf16
        "conv_b": b_fused,                             # (1, Fp) f32
        "fc_w": fc_w_p,                                # (Fp, Cp) f32
        "fc_b": fc_b_p,                                # (1, Cp) f32
        "num_classes": num_classes,
    }


def _default_vmem_limit():
    # ~3/4 of the chip's VMEM (v5e/v6e -> ~96 MiB, v7x -> ~48 MiB), capped at 100 MiB.
    try:
        cap = getattr(pltpu.get_tpu_info(), "vmem_capacity_bytes", 64 * 1024 * 1024)
    except Exception:
        cap = 64 * 1024 * 1024
    return int(min(100 * 1024 * 1024, (cap * 3) // 4))


def _default_batch_tile(batch):
    # Keep >= 2 grid steps (so dimension_semantics=("parallel",) can feed both v7x TCs) while
    # growing the tile up to 128 rows to amortize the ~0.35us/step overhead on v5e/v6e.
    half = (batch + 1) // 2
    return int(min(128, max(16, _round_up(half, 16))))


def news_title_classifier(input_ids, params, filter_sizes, num_filters, *,
                          batch_tile=None, vmem_limit_bytes=None):
    batch, seq_len = input_ids.shape
    k_min, k_max = min(filter_sizes), max(filter_sizes)
    lp = seq_len + (k_max - k_min)       # time-pad so every tap of the fused weight is in range
    lout = lp - k_max + 1                # == seq_len - k_min + 1
    total_f = int(sum(num_filters))
    num_classes = params["num_classes"]
    _, embed_dim = params["embedding"].shape
    f_pad = params["conv_w"].shape[-1]
    c_pad = params["fc_b"].shape[-1]

    if batch_tile is None:
        batch_tile = _default_batch_tile(batch)
    assert batch_tile % 16 == 0          # bf16 sublane tile -> layout-preserving reshapes
    if vmem_limit_bytes is None:
        vmem_limit_bytes = _default_vmem_limit()

    tb = batch_tile
    padded_batch = _round_up(batch, tb)

    # Embedding gather in XLA (jnp.take): keeps the (V, E) table out of VMEM entirely; the
    # (Lp, B, E) bf16 activation slab it feeds the kernel is negligible HBM traffic.
    ids = jnp.pad(input_ids.astype(jnp.int32),
                  ((0, padded_batch - batch), (0, lp - seq_len)))        # pad with token 0
    x = jnp.take(params["embedding"], ids, axis=0)                       # (Bp, Lp, E) bf16
    x = jnp.transpose(x, (1, 0, 2))                                      # (Lp, Bp, E) time-major

    # Host-precomputed valid-time mask: column of filter width k is valid for t < seq_len-k+1;
    # padded filter columns get an all-zero mask (their fc rows are zero too).
    tmax = jnp.concatenate([jnp.full((f,), seq_len - k + 1, jnp.int32)
                            for k, f in zip(filter_sizes, num_filters)])
    tmax = jnp.pad(tmax, (0, f_pad - total_f))
    t_idx = jnp.arange(lout, dtype=jnp.int32)[:, None]
    mask = (t_idx < tmax[None, :]).astype(jnp.float32)[:, None, :]       # (Lout, 1, Fp)

    grid = (padded_batch // tb,)

    def build_call(single_buffer_consts):
        def const_spec(shape):
            n = len(shape)
            idx = lambda i: (0,) * n
            if single_buffer_consts:
                # Constant index_map -> double-buffering buys nothing; halve its VMEM footprint.
                return pl.BlockSpec(shape, idx, pipeline_mode=pl.Buffered(1))
            return pl.BlockSpec(shape, idx)

        return pl.pallas_call(
            news_cnn_kernel,
            out_shape=jax.ShapeDtypeStruct((padded_batch, c_pad), jnp.float32),
            grid_spec=pltpu.PrefetchScalarGridSpec(
                num_scalar_prefetch=0,
                grid=grid,
                in_specs=[
                    pl.BlockSpec((lp, tb, embed_dim), lambda i: (0, i, 0)),  # x (batch-tiled)
                    const_spec((k_max, embed_dim, f_pad)),                   # fused conv W
                    const_spec((1, f_pad)),                                  # fused conv bias
                    const_spec((lout, 1, f_pad)),                            # valid-time mask
                    const_spec((f_pad, c_pad)),                              # fc W^T
                    const_spec((1, c_pad)),                                  # fc bias
                ],
                out_specs=pl.BlockSpec((tb, c_pad), lambda i: (i, 0)),
            ),
            compiler_params=pltpu.CompilerParams(
                dimension_semantics=("parallel",),     # shard batch tiles across TCs (v7x)
                vmem_limit_bytes=vmem_limit_bytes,
            ),
        )

    args = (x, params["conv_w"], params["conv_b"], mask, params["fc_w"], params["fc_b"])
    try:
        out = build_call(True)(*args)
    except Exception:
        # Installed jax may not support BlockSpec(pipeline_mode=...); fall back cleanly.
        out = build_call(False)(*args)

    # Padded batch rows / padded class columns carry garbage-by-construction; slice them off.
    return out[:batch, :num_classes]


def reference_forward(input_ids, embedding, conv_ws, conv_bs, fc_w, fc_b):
    """Pure-JAX reference (lax.conv) on bf16-rounded embedding/conv weights, f32 accumulation."""
    emb = embedding.astype(jnp.bfloat16).astype(jnp.float32)
    x = jnp.take(emb, input_ids, axis=0)                              # (B, L, E)
    x_ncw = jnp.transpose(x, (0, 2, 1))                               # (B, E, L)
    feats = []
    for w, b in zip(conv_ws, conv_bs):                                # w: (F, E, k)
        w32 = w.astype(jnp.bfloat16).astype(jnp.float32)
        conv = jax.lax.conv_general_dilated(
            x_ncw, w32, window_strides=(1,), padding="VALID",
            dimension_numbers=("NCH", "OIH", "NCH"))                  # (B, F, Lout_k)
        conv = jax.nn.relu(conv + b[None, :, None])
        feats.append(jnp.max(conv, axis=2))                           # (B, F)
    feat = jnp.concatenate(feats, axis=1)                             # (B, 3F)
    return feat @ fc_w.T + fc_b                                       # (B, C)


if __name__ == "__main__":
    # Small deterministic configuration (batch/tile chosen so the batch grid has 2 steps).
    batch, seq_len = 32, 16
    vocab_size, embed_dim = 50, 32
    filter_sizes = (3, 4, 5)
    num_filters = (32, 32, 32)
    num_classes = 2

    key = jax.random.PRNGKey(0)
    k_emb, k_w3, k_w4, k_w5, k_b3, k_b4, k_b5, k_fc, k_ids = jax.random.split(key, 9)

    # nn.Embedding(padding_idx=0): row 0 is zero.
    embedding = jax.random.normal(k_emb, (vocab_size, embed_dim), jnp.float32) * 0.1
    embedding = embedding.at[0].set(0.0)

    # Conv1d weights in PyTorch layout (out_ch, in_ch, k) + biases.
    conv_ws, conv_bs = [], []
    for kk, f, kw, kb in zip(filter_sizes, num_filters,
                             (k_w3, k_w4, k_w5), (k_b3, k_b4, k_b5)):
        scale = 1.0 / (embed_dim * kk) ** 0.5
        conv_ws.append(jax.random.normal(kw, (f, embed_dim, kk), jnp.float32) * scale)
        conv_bs.append(jax.random.normal(kb, (f,), jnp.float32) * scale)

    total_f = sum(num_filters)
    fc_w = jax.random.normal(k_fc, (num_classes, total_f), jnp.float32) / total_f ** 0.5
    fc_b = jnp.zeros((num_classes,), jnp.float32)

    input_ids = jax.random.randint(k_ids, (batch, seq_len), 0, vocab_size, dtype=jnp.int32)

    params = pack_params(embedding, conv_ws, conv_bs, fc_w, fc_b, filter_sizes, num_filters)
    logits = news_title_classifier(input_ids, params, filter_sizes, num_filters)
    logits = jax.block_until_ready(logits)

    ref = reference_forward(input_ids, embedding, conv_ws, conv_bs, fc_w, fc_b)
    assert logits.shape == (batch, num_classes)
    assert jnp.allclose(logits, ref, rtol=2e-4, atol=2e-4), (
        float(jnp.max(jnp.abs(logits - ref))), logits, ref)

    # TODO(synk): training-mode (stochastic) dropout is not implemented; eval-mode identity only.
    print("KERNEL_OK")
</pallas_src>

<mosaic_0001>
module attributes {stable_mosaic.version = 11 : i64} {
  func.func @news_cnn_kernel(%arg0: i32, %arg1: memref<18x16x32xbf16, #tpu.memory_space<vmem>>, %arg2: memref<5x32x128xbf16, #tpu.memory_space<vmem>>, %arg3: memref<1x128xf32, #tpu.memory_space<vmem>>, %arg4: memref<14x1x128xf32, #tpu.memory_space<vmem>>, %arg5: memref<128x128xf32, #tpu.memory_space<vmem>>, %arg6: memref<1x128xf32, #tpu.memory_space<vmem>>, %arg7: memref<16x128xf32, #tpu.memory_space<vmem>>) attributes {dimension_semantics = [#tpu.dimension_semantics<parallel>], iteration_bounds = array<i64: 2>, scalar_prefetch = 0 : i64, scratch_operands = 0 : i64, tpu.core_type = #tpu.core_type<tc>, window_params = [{transform_indices = @transform_0, window_bounds = array<i64: 18, 16, 32>}, {pipeline_mode = #tpu.pipeline_mode<synchronous>, transform_indices = @transform_1, window_bounds = array<i64: 5, 32, 128>}, {pipeline_mode = #tpu.pipeline_mode<synchronous>, transform_indices = @transform_2, window_bounds = array<i64: 1, 128>}, {pipeline_mode = #tpu.pipeline_mode<synchronous>, transform_indices = @transform_3, window_bounds = array<i64: 14, 1, 128>}, {pipeline_mode = #tpu.pipeline_mode<synchronous>, transform_indices = @transform_4, window_bounds = array<i64: 128, 128>}, {pipeline_mode = #tpu.pipeline_mode<synchronous>, transform_indices = @transform_5, window_bounds = array<i64: 1, 128>}, {transform_indices = @transform_6, window_bounds = array<i64: 16, 128>}]} {
    %c0 = arith.constant 0 : index
    %c0_0 = arith.constant 0 : index
    %c0_1 = arith.constant 0 : index
    %0 = vector.load %arg1[%c0, %c0_0, %c0_1] : memref<18x16x32xbf16, #tpu.memory_space<vmem>>, vector<18x16x32xbf16>
    %1 = vector.extract_strided_slice %0 {offsets = [0, 0, 0], sizes = [14, 16, 32], strides = [1, 1, 1]} : vector<18x16x32xbf16> to vector<14x16x32xbf16>
    %2 = vector.shape_cast %1 : vector<14x16x32xbf16> to vector<224x32xbf16>
    %c0_2 = arith.constant 0 : index
    %c0_3 = arith.constant 0 : index
    %c0_4 = arith.constant 0 : index
    %3 = vector.load %arg2[%c0_2, %c0_3, %c0_4] : memref<5x32x128xbf16, #tpu.memory_space<vmem>>, vector<1x32x128xbf16>
    %4 = vector.shape_cast %3 : vector<1x32x128xbf16> to vector<32x128xbf16>
    %cst = arith.constant dense<0.000000e+00> : vector<224x128xf32>
    %5 = tpu.matmul %2, %4, %cst {dimension_numbers = #tpu.dot_dimension_numbers<[1], [0], [0], [1], [0, 0, 1, 1], [], []>} : vector<224x32xbf16>, vector<32x128xbf16>, vector<224x128xf32> -> vector<224x128xf32>
    %6 = vector.extract_strided_slice %0 {offsets = [1, 0, 0], sizes = [14, 16, 32], strides = [1, 1, 1]} : vector<18x16x32xbf16> to vector<14x16x32xbf16>
    %7 = vector.shape_cast %6 : vector<14x16x32xbf16> to vector<224x32xbf16>
    %c1 = arith.constant 1 : index
    %c0_5 = arith.constant 0 : index
    %c0_6 = arith.constant 0 : index
    %8 = vector.load %arg2[%c1, %c0_5, %c0_6] : memref<5x32x128xbf16, #tpu.memory_space<vmem>>, vector<1x32x128xbf16>
    %9 = vector.shape_cast %8 : vector<1x32x128xbf16> to vector<32x128xbf16>
    %cst_7 = arith.constant dense<0.000000e+00> : vector<224x128xf32>
    %10 = tpu.matmul %7, %9, %cst_7 {dimension_numbers = #tpu.dot_dimension_numbers<[1], [0], [0], [1], [0, 0, 1, 1], [], []>} : vector<224x32xbf16>, vector<32x128xbf16>, vector<224x128xf32> -> vector<224x128xf32>
    %11 = arith.addf %5, %10 : vector<224x128xf32>
    %12 = vector.extract_strided_slice %0 {offsets = [2, 0, 0], sizes = [14, 16, 32], strides = [1, 1, 1]} : vector<18x16x32xbf16> to vector<14x16x32xbf16>
    %13 = vector.shape_cast %12 : vector<14x16x32xbf16> to vector<224x32xbf16>
    %c2 = arith.constant 2 : index
    %c0_8 = arith.constant 0 : index
    %c0_9 = arith.constant 0 : index
    %14 = vector.load %arg2[%c2, %c0_8, %c0_9] : memref<5x32x128xbf16, #tpu.memory_space<vmem>>, vector<1x32x128xbf16>
    %15 = vector.shape_cast %14 : vector<1x32x128xbf16> to vector<32x128xbf16>
    %cst_10 = arith.constant dense<0.000000e+00> : vector<224x128xf32>
    %16 = tpu.matmul %13, %15, %cst_10 {dimension_numbers = #tpu.dot_dimension_numbers<[1], [0], [0], [1], [0, 0, 1, 1], [], []>} : vector<224x32xbf16>, vector<32x128xbf16>, vector<224x128xf32> -> vector<224x128xf32>
    %17 = arith.addf %11, %16 : vector<224x128xf32>
    %18 = vector.extract_strided_slice %0 {offsets = [3, 0, 0], sizes = [14, 16, 32], strides = [1, 1, 1]} : vector<18x16x32xbf16> to vector<14x16x32xbf16>
    %19 = vector.shape_cast %18 : vector<14x16x32xbf16> to vector<224x32xbf16>
    %c3 = arith.constant 3 : index
    %c0_11 = arith.constant 0 : index
    %c0_12 = arith.constant 0 : index
    %20 = vector.load %arg2[%c3, %c0_11, %c0_12] : memref<5x32x128xbf16, #tpu.memory_space<vmem>>, vector<1x32x128xbf16>
    %21 = vector.shape_cast %20 : vector<1x32x128xbf16> to vector<32x128xbf16>
    %cst_13 = arith.constant dense<0.000000e+00> : vector<224x128xf32>
    %22 = tpu.matmul %19, %21, %cst_13 {dimension_numbers = #tpu.dot_dimension_numbers<[1], [0], [0], [1], [0, 0, 1, 1], [], []>} : vector<224x32xbf16>, vector<32x128xbf16>, vector<224x128xf32> -> vector<224x128xf32>
    %23 = arith.addf %17, %22 : vector<224x128xf32>
    %24 = vector.extract_strided_slice %0 {offsets = [4, 0, 0], sizes = [14, 16, 32], strides = [1, 1, 1]} : vector<18x16x32xbf16> to vector<14x16x32xbf16>
    %25 = vector.shape_cast %24 : vector<14x16x32xbf16> to vector<224x32xbf16>
    %c4 = arith.constant 4 : index
    %c0_14 = arith.constant 0 : index
    %c0_15 = arith.constant 0 : index
    %26 = vector.load %arg2[%c4, %c0_14, %c0_15] : memref<5x32x128xbf16, #tpu.memory_space<vmem>>, vector<1x32x128xbf16>
    %27 = vector.shape_cast %26 : vector<1x32x128xbf16> to vector<32x128xbf16>
    %cst_16 = arith.constant dense<0.000000e+00> : vector<224x128xf32>
    %28 = tpu.matmul %25, %27, %cst_16 {dimension_numbers = #tpu.dot_dimension_numbers<[1], [0], [0], [1], [0, 0, 1, 1], [], []>} : vector<224x32xbf16>, vector<32x128xbf16>, vector<224x128xf32> -> vector<224x128xf32>
    %29 = arith.addf %23, %28 : vector<224x128xf32>
    %c0_17 = arith.constant 0 : index
    %c0_18 = arith.constant 0 : index
    %30 = vector.load %arg3[%c0_17, %c0_18] : memref<1x128xf32, #tpu.memory_space<vmem>>, vector<1x128xf32>
    %31 = vector.broadcast %30 : vector<1x128xf32> to vector<224x128xf32>
    %32 = arith.addf %29, %31 : vector<224x128xf32>
    %cst_19 = arith.constant 0.000000e+00 : f32
    %33 = vector.broadcast %cst_19 : f32 to vector<224x128xf32>
    %34 = arith.maximumf %32, %33 : vector<224x128xf32>
    %35 = vector.shape_cast %34 : vector<224x128xf32> to vector<14x16x128xf32>
    %c0_20 = arith.constant 0 : index
    %c0_21 = arith.constant 0 : index
    %c0_22 = arith.constant 0 : index
    %36 = vector.load %arg4[%c0_20, %c0_21, %c0_22] : memref<14x1x128xf32, #tpu.memory_space<vmem>>, vector<14x1x128xf32>
    %37 = vector.broadcast %36 : vector<14x1x128xf32> to vector<14x16x128xf32>
    %38 = arith.mulf %35, %37 : vector<14x16x128xf32>
    %cst_23 = arith.constant dense<0xFF800000> : vector<16x128xf32>
    %39 = vector.multi_reduction <maximumf>, %38, %cst_23 [0] : vector<14x16x128xf32> to vector<16x128xf32>
    %c0_24 = arith.constant 0 : index
    %c0_25 = arith.constant 0 : index
    %40 = vector.load %arg5[%c0_24, %c0_25] : memref<128x128xf32, #tpu.memory_space<vmem>>, vector<128x128xf32>
    %cst_26 = arith.constant dense<0.000000e+00> : vector<16x128xf32>
    %41 = tpu.matmul %39, %40, %cst_26 {dimension_numbers = #tpu.dot_dimension_numbers<[1], [0], [0], [1], [0, 0, 1, 1], [], []>} : vector<16x128xf32>, vector<128x128xf32>, vector<16x128xf32> -> vector<16x128xf32>
    %c0_27 = arith.constant 0 : index
    %c0_28 = arith.constant 0 : index
    %42 = vector.load %arg6[%c0_27, %c0_28] : memref<1x128xf32, #tpu.memory_space<vmem>>, vector<1x128xf32>
    %43 = vector.broadcast %42 : vector<1x128xf32> to vector<16x128xf32>
    %44 = arith.addf %41, %43 : vector<16x128xf32>
    %c0_29 = arith.constant 0 : index
    %c0_30 = arith.constant 0 : index
    %45 = vector.load %arg7[%c0_29, %c0_30] : memref<16x128xf32, #tpu.memory_space<vmem>>, vector<16x128xf32>
    tpu.vector_store %arg7[%c0_29, %c0_30], %44 {strides = array<i32>} : memref<16x128xf32, #tpu.memory_space<vmem>>, vector<16x128xf32>,
    return
  }
  func.func @transform_0(%arg0: i32) -> (i32, i32, i32) {
    %c0_i32 = arith.constant 0 : i32
    %c0_i32_0 = arith.constant 0 : i32
    %c0_i32_1 = arith.constant 0 : i32
    return %c0_i32, %arg0, %c0_i32_0 : i32, i32, i32
  }
  func.func @transform_1(%arg0: i32) -> (i32, i32, i32) {
    %c0_i32 = arith.constant 0 : i32
    %c0_i32_0 = arith.constant 0 : i32
    %c0_i32_1 = arith.constant 0 : i32
    %c0_i32_2 = arith.constant 0 : i32
    return %c0_i32, %c0_i32_0, %c0_i32_1 : i32, i32, i32
  }
  func.func @transform_2(%arg0: i32) -> (i32, i32) {
    %c0_i32 = arith.constant 0 : i32
    %c0_i32_0 = arith.constant 0 : i32
    %c0_i32_1 = arith.constant 0 : i32
    return %c0_i32, %c0_i32_0 : i32, i32
  }
  func.func @transform_3(%arg0: i32) -> (i32, i32, i32) {
    %c0_i32 = arith.constant 0 : i32
    %c0_i32_0 = arith.constant 0 : i32
    %c0_i32_1 = arith.constant 0 : i32
    %c0_i32_2 = arith.constant 0 : i32
    return %c0_i32, %c0_i32_0, %c0_i32_1 : i32, i32, i32
  }
  func.func @transform_4(%arg0: i32) -> (i32, i32) {
    %c0_i32 = arith.constant 0 : i32
    %c0_i32_0 = arith.constant 0 : i32
    %c0_i32_1 = arith.constant 0 : i32
    return %c0_i32, %c0_i32_0 : i32, i32
  }
  func.func @transform_5(%arg0: i32) -> (i32, i32) {
    %c0_i32 = arith.constant 0 : i32
    %c0_i32_0 = arith.constant 0 : i32
    %c0_i32_1 = arith.constant 0 : i32
    return %c0_i32, %c0_i32_0 : i32, i32
  }
  func.func @transform_6(%arg0: i32) -> (i32, i32) {
    %c0_i32 = arith.constant 0 : i32
    %c0_i32_0 = arith.constant 0 : i32
    return %arg0, %c0_i32 : i32, i32
  }
}

module attributes {stable_mosaic.version = 11 : i64} {
  func.func @news_cnn_kernel(%arg0: i32, %arg1: memref<18x16x32xbf16, #tpu.memory_space<vmem>>, %arg2: memref<5x32x128xbf16, #tpu.memory_space<vmem>>, %arg3: memref<1x128xf32, #tpu.memory_space<vmem>>, %arg4: memref<14x1x128xf32, #tpu.memory_space<vmem>>, %arg5: memref<128x128xf32, #tpu.memory_space<vmem>>, %arg6: memref<1x128xf32, #tpu.memory_space<vmem>>, %arg7: memref<16x128xf32, #tpu.memory_space<vmem>>) attributes {dimension_semantics = [#tpu.dimension_semantics<parallel>], iteration_bounds = array<i64: 2>, scalar_prefetch = 0 : i64, scratch_operands = 0 : i64, tpu.core_type = #tpu.core_type<tc>, window_params = [{transform_indices = @transform_0, window_bounds = array<i64: 18, 16, 32>}, {pipeline_mode = #tpu.pipeline_mode<synchronous>, transform_indices = @transform_1, window_bounds = array<i64: 5, 32, 128>}, {pipeline_mode = #tpu.pipeline_mode<synchronous>, transform_indices = @transform_2, window_bounds = array<i64: 1, 128>}, {pipeline_mode = #tpu.pipeline_mode<synchronous>, transform_indices = @transform_3, window_bounds = array<i64: 14, 1, 128>}, {pipeline_mode = #tpu.pipeline_mode<synchronous>, transform_indices = @transform_4, window_bounds = array<i64: 128, 128>}, {pipeline_mode = #tpu.pipeline_mode<synchronous>, transform_indices = @transform_5, window_bounds = array<i64: 1, 128>}, {transform_indices = @transform_6, window_bounds = array<i64: 16, 128>}]} {
    %c0 = arith.constant 0 : index
    %c0_0 = arith.constant 0 : index
    %c0_1 = arith.constant 0 : index
    %0 = vector.load %arg1[%c0, %c0_0, %c0_1] : memref<18x16x32xbf16, #tpu.memory_space<vmem>>, vector<18x16x32xbf16>
    %1 = vector.extract_strided_slice %0 {offsets = [0, 0, 0], sizes = [14, 16, 32], strides = [1, 1, 1]} : vector<18x16x32xbf16> to vector<14x16x32xbf16>
    %2 = vector.shape_cast %1 : vector<14x16x32xbf16> to vector<224x32xbf16>
    %c0_2 = arith.constant 0 : index
    %c0_3 = arith.constant 0 : index
    %c0_4 = arith.constant 0 : index
    %3 = vector.load %arg2[%c0_2, %c0_3, %c0_4] : memref<5x32x128xbf16, #tpu.memory_space<vmem>>, vector<1x32x128xbf16>
    %4 = vector.shape_cast %3 : vector<1x32x128xbf16> to vector<32x128xbf16>
    %cst = arith.constant dense<0.000000e+00> : vector<224x128xf32>
    %5 = tpu.matmul %2, %4, %cst {dimension_numbers = #tpu.dot_dimension_numbers<[1], [0], [0], [1], [0, 0, 1, 1], [], []>} : vector<224x32xbf16>, vector<32x128xbf16>, vector<224x128xf32> -> vector<224x128xf32>
    %6 = vector.extract_strided_slice %0 {offsets = [1, 0, 0], sizes = [14, 16, 32], strides = [1, 1, 1]} : vector<18x16x32xbf16> to vector<14x16x32xbf16>
    %7 = vector.shape_cast %6 : vector<14x16x32xbf16> to vector<224x32xbf16>
    %c1 = arith.constant 1 : index
    %c0_5 = arith.constant 0 : index
    %c0_6 = arith.constant 0 : index
    %8 = vector.load %arg2[%c1, %c0_5, %c0_6] : memref<5x32x128xbf16, #tpu.memory_space<vmem>>, vector<1x32x128xbf16>
    %9 = vector.shape_cast %8 : vector<1x32x128xbf16> to vector<32x128xbf16>
    %cst_7 = arith.constant dense<0.000000e+00> : vector<224x128xf32>
    %10 = tpu.matmul %7, %9, %cst_7 {dimension_numbers = #tpu.dot_dimension_numbers<[1], [0], [0], [1], [0, 0, 1, 1], [], []>} : vector<224x32xbf16>, vector<32x128xbf16>, vector<224x128xf32> -> vector<224x128xf32>
    %11 = arith.addf %5, %10 : vector<224x128xf32>
    %12 = vector.extract_strided_slice %0 {offsets = [2, 0, 0], sizes = [14, 16, 32], strides = [1, 1, 1]} : vector<18x16x32xbf16> to vector<14x16x32xbf16>
    %13 = vector.shape_cast %12 : vector<14x16x32xbf16> to vector<224x32xbf16>
    %c2 = arith.constant 2 : index
    %c0_8 = arith.constant 0 : index
    %c0_9 = arith.constant 0 : index
    %14 = vector.load %arg2[%c2, %c0_8, %c0_9] : memref<5x32x128xbf16, #tpu.memory_space<vmem>>, vector<1x32x128xbf16>
    %15 = vector.shape_cast %14 : vector<1x32x128xbf16> to vector<32x128xbf16>
    %cst_10 = arith.constant dense<0.000000e+00> : vector<224x128xf32>
    %16 = tpu.matmul %13, %15, %cst_10 {dimension_numbers = #tpu.dot_dimension_numbers<[1], [0], [0], [1], [0, 0, 1, 1], [], []>} : vector<224x32xbf16>, vector<32x128xbf16>, vector<224x128xf32> -> vector<224x128xf32>
    %17 = arith.addf %11, %16 : vector<224x128xf32>
    %18 = vector.extract_strided_slice %0 {offsets = [3, 0, 0], sizes = [14, 16, 32], strides = [1, 1, 1]} : vector<18x16x32xbf16> to vector<14x16x32xbf16>
    %19 = vector.shape_cast %18 : vector<14x16x32xbf16> to vector<224x32xbf16>
    %c3 = arith.constant 3 : index
    %c0_11 = arith.constant 0 : index
    %c0_12 = arith.constant 0 : index
    %20 = vector.load %arg2[%c3, %c0_11, %c0_12] : memref<5x32x128xbf16, #tpu.memory_space<vmem>>, vector<1x32x128xbf16>
    %21 = vector.shape_cast %20 : vector<1x32x128xbf16> to vector<32x128xbf16>
    %cst_13 = arith.constant dense<0.000000e+00> : vector<224x128xf32>
    %22 = tpu.matmul %19, %21, %cst_13 {dimension_numbers = #tpu.dot_dimension_numbers<[1], [0], [0], [1], [0, 0, 1, 1], [], []>} : vector<224x32xbf16>, vector<32x128xbf16>, vector<224x128xf32> -> vector<224x128xf32>
    %23 = arith.addf %17, %22 : vector<224x128xf32>
    %24 = vector.extract_strided_slice %0 {offsets = [4, 0, 0], sizes = [14, 16, 32], strides = [1, 1, 1]} : vector<18x16x32xbf16> to vector<14x16x32xbf16>
    %25 = vector.shape_cast %24 : vector<14x16x32xbf16> to vector<224x32xbf16>
    %c4 = arith.constant 4 : index
    %c0_14 = arith.constant 0 : index
    %c0_15 = arith.constant 0 : index
    %26 = vector.load %arg2[%c4, %c0_14, %c0_15] : memref<5x32x128xbf16, #tpu.memory_space<vmem>>, vector<1x32x128xbf16>
    %27 = vector.shape_cast %26 : vector<1x32x128xbf16> to vector<32x128xbf16>
    %cst_16 = arith.constant dense<0.000000e+00> : vector<224x128xf32>
    %28 = tpu.matmul %25, %27, %cst_16 {dimension_numbers = #tpu.dot_dimension_numbers<[1], [0], [0], [1], [0, 0, 1, 1], [], []>} : vector<224x32xbf16>, vector<32x128xbf16>, vector<224x128xf32> -> vector<224x128xf32>
    %29 = arith.addf %23, %28 : vector<224x128xf32>
    %c0_17 = arith.constant 0 : index
    %c0_18 = arith.constant 0 : index
    %30 = vector.load %arg3[%c0_17, %c0_18] : memref<1x128xf32, #tpu.memory_space<vmem>>, vector<1x128xf32>
    %31 = vector.broadcast %30 : vector<1x128xf32> to vector<224x128xf32>
    %32 = arith.addf %29, %31 : vector<224x128xf32>
    %cst_19 = arith.constant 0.000000e+00 : f32
    %33 = vector.broadcast %cst_19 : f32 to vector<224x128xf32>
    %34 = arith.maximumf %32, %33 : vector<224x128xf32>
    %35 = vector.shape_cast %34 : vector<224x128xf32> to vector<14x16x128xf32>
    %c0_20 = arith.constant 0 : index
    %c0_21 = arith.constant 0 : index
    %c0_22 = arith.constant 0 : index
    %36 = vector.load %arg4[%c0_20, %c0_21, %c0_22] : memref<14x1x128xf32, #tpu.memory_space<vmem>>, vector<14x1x128xf32>
    %37 = vector.broadcast %36 : vector<14x1x128xf32> to vector<14x16x128xf32>
    %38 = arith.mulf %35, %37 : vector<14x16x128xf32>
    %cst_23 = arith.constant dense<0xFF800000> : vector<16x128xf32>
    %39 = vector.multi_reduction <maximumf>, %38, %cst_23 [0] : vector<14x16x128xf32> to vector<16x128xf32>
    %c0_24 = arith.constant 0 : index
    %c0_25 = arith.constant 0 : index
    %40 = vector.load %arg5[%c0_24, %c0_25] : memref<128x128xf32, #tpu.memory_space<vmem>>, vector<128x128xf32>
    %cst_26 = arith.constant dense<0.000000e+00> : vector<16x128xf32>
    %41 = tpu.matmul %39, %40, %cst_26 {dimension_numbers = #tpu.dot_dimension_numbers<[1], [0], [0], [1], [0, 0, 1, 1], [], []>} : vector<16x128xf32>, vector<128x128xf32>, vector<16x128xf32> -> vector<16x128xf32>
    %c0_27 = arith.constant 0 : index
    %c0_28 = arith.constant 0 : index
    %42 = vector.load %arg6[%c0_27, %c0_28] : memref<1x128xf32, #tpu.memory_space<vmem>>, vector<1x128xf32>
    %43 = vector.broadcast %42 : vector<1x128xf32> to vector<16x128xf32>
    %44 = arith.addf %41, %43 : vector<16x128xf32>
    %c0_29 = arith.constant 0 : index
    %c0_30 = arith.constant 0 : index
    %45 = vector.load %arg7[%c0_29, %c0_30] : memref<16x128xf32, #tpu.memory_space<vmem>>, vector<16x128xf32>
    tpu.vector_store %arg7[%c0_29, %c0_30], %44 {strides = array<i32>} : memref<16x128xf32, #tpu.memory_space<vmem>>, vector<16x128xf32>,
    return
  }
  func.func @transform_0(%arg0: i32) -> (i32, i32, i32) {
    %c0_i32 = arith.constant 0 : i32
    %c0_i32_0 = arith.constant 0 : i32
    %c0_i32_1 = arith.constant 0 : i32
    return %c0_i32, %arg0, %c0_i32_0 : i32, i32, i32
  }
  func.func @transform_1(%arg0: i32) -> (i32, i32, i32) {
    %c0_i32 = arith.constant 0 : i32
    %c0_i32_0 = arith.constant 0 : i32
    %c0_i32_1 = arith.constant 0 : i32
    %c0_i32_2 = arith.constant 0 : i32
    return %c0_i32, %c0_i32_0, %c0_i32_1 : i32, i32, i32
  }
  func.func @transform_2(%arg0: i32) -> (i32, i32) {
    %c0_i32 = arith.constant 0 : i32
    %c0_i32_0 = arith.constant 0 : i32
    %c0_i32_1 = arith.constant 0 : i32
    return %c0_i32, %c0_i32_0 : i32, i32
  }
  func.func @transform_3(%arg0: i32) -> (i32, i32, i32) {
    %c0_i32 = arith.constant 0 : i32
    %c0_i32_0 = arith.constant 0 : i32
    %c0_i32_1 = arith.constant 0 : i32
    %c0_i32_2 = arith.constant 0 : i32
    return %c0_i32, %c0_i32_0, %c0_i32_1 : i32, i32, i32
  }
  func.func @transform_4(%arg0: i32) -> (i32, i32) {
    %c0_i32 = arith.constant 0 : i32
    %c0_i32_0 = arith.constant 0 : i32
    %c0_i32_1 = arith.constant 0 : i32
    return %c0_i32, %c0_i32_0 : i32, i32
  }
  func.func @transform_5(%arg0: i32) -> (i32, i32) {
    %c0_i32 = arith.constant 0 : i32
    %c0_i32_0 = arith.constant 0 : i32
    %c0_i32_1 = arith.constant 0 : i32
    return %c0_i32, %c0_i32_0 : i32, i32
  }
  func.func @transform_6(%arg0: i32) -> (i32, i32) {
    %c0_i32 = arith.constant 0 : i32
    %c0_i32_0 = arith.constant 0 : i32
    return %arg0, %c0_i32 : i32, i32
  }
}

</mosaic_0001>

<bundles_post_ra>
// kernel: tpu_custom_call.1
= control target key start
LH: loop header
LB: loop body
LE: loop exit
PB: predicated region body
PF: predicated region fallthrough
CT: control target
= control target key end

     0   :  { %s2510_s0 = inlined_call_operand.hbm [shape: bf16[18,32,32], index: 0, kind: input, shape index: {}]   ;;  %s2511_s1 = inlined_call_operand.hbm [shape: bf16[5,32,128], index: 1, kind: input, shape index: {}]   ;;  %s2512_s2 = inlined_call_operand.vmem [shape: f32[1,128], index: 2, kind: input, shape index: {}]   ;;  %s2513_s3 = inlined_call_operand.hbm [shape: f32[14,1,128], index: 3, kind: input, shape index: {}]   ;;  %s2514_s4 = inlined_call_operand.hbm [shape: f32[128,128], index: 4, kind: input, shape index: {}]   ;;  %s2515_s5 = inlined_call_operand.vmem [shape: f32[1,128], index: 5, kind: input, shape index: {}]   ;;  %s2516_s6 = inlined_call_operand.hbm [shape: f32[32,128], index: 6, kind: output, shape index: {}]  }
   0x1   :  { %2520 = sst [smem:[#allocation21_spill]] %s2511_s1 }
   0x2   :  { %2521 = sst [smem:[#allocation22_spill]] %s2513_s3 }
   0x3   :  { %11 = vsyncpa [#allocation3], 0 }
   0x4   :  { %13 = vsyncpa [#allocation3 + $0x1], 0 }
   0x5   :  { %14 = vsyncpa [#allocation6], 0 }
   0x6   :  { %15 = vsyncpa [#allocation9], 0 }
   0x7   :  { %16 = vsyncpa [#allocation4], 0 }
   0x8   :  { %18 = vsyncpa [#allocation4 + $0x1], 0  ;;  %s1994_s21 = smov 0   ;;  %s1996_s22 = smov 0  }
   0x9   :  { %s1998_s23 = smov 0   ;;  %s2000_s24 = smov 0  }
   0xa LB: > { %s2015_s25 = sadd.s32 4294967295, %s1940_s24   ;;  %s1427_s26 = sadd.s32 4294967294, %s1940_s24   ;;  %s1940_s24 = sphi %s2000_s24, %s2534_s24   ;;  %s1936_s23 = sphi %s1998_s23, %s2538_s23   ;;  %s1932_s22 = sphi %s1996_s22, %s2537_s22   ;;  %s1928_s21 = sphi %s1994_s21, %s2536_s21  }
   0xb   : > { %s2019_s27 = sadd.s32 1, %s1940_s24   ;;  %s31_s28 = sadd.s32 1, %s1936_s23 }
   0xc   : > { %2522 = sst [smem:[#allocation18_spill]] %s2019_s27  ;;  %s28_s29 = ssub.s32 %s1940_s24, %s2019_s27 }
   0xd   : > { %p38_p0 = scmp.ne.s32.totalorder %s1936_s23, %s1932_s22  ;;  %p29_p1 = scmp.eq.s32.totalorder %s28_s29, 0 }
   0xe   : > { %p39_p2 = scmp.eq.s32.totalorder %s1940_s24, 0  ;;  %p44_p3 = scmp.ne.s32.totalorder %s1932_s22, %s1928_s21 }
   0xf   : > { %p45_p4 = scmp.eq.s32.totalorder %s2015_s25, 0  ;;  %p173_p7 = scmp.eq.s32.totalorder %s2015_s25, 1 }
  0x10   : > { %s2031_s30 = scalar_select %p29_p1, %s1936_s23, %s31_s28  }
  0x11   : > { %p2033_p5 = por %p39_p2, %p38_p0  ;;  %p2039_p6 = por %p45_p4, %p44_p3 }
  0x12   : > { %2523 = sst [smem:[#allocation19_spill]] %s2031_s30  ;;  %p179_p8 = scmp.eq.s32.totalorder %s1427_s26, 1 }
  0x13   : > { %p1428_p9 = scmp.ge.s32.totalorder %s1940_s24, 1  ;;  %p186_p10 = scmp.lt.s32.totalorder %s1940_s24, 3 }
  0x14   : > { %p2046_p11 = por %p173_p7, %p38_p0  ;;  %p2050_p12 = por %p179_p8, %p44_p3 }
  0x15   : > { %p2054_p13 = pnand %p1428_p9, %p186_p10  ;;  %s2530_s1 = sld [smem:[#allocation21_spill]] }
  0x16   : > { %s2527_s10 = scalar_select %p2050_p12, 1, 0 }
  0x17   : > { %p1690_p1 = pneg %p2054_p13  ;;  %s1942_s15 = smov [#allocation5]  }
  0x18   : > { %2528 = sst [smem:[#allocation20_spill]] %s2527_s10  ;;  %s199_s16 = sshll.u32 %s1942_s15, 4  ;;  %s200_s16 = int_to_ptr.vmem [resolvable:$true] %s199_s16 }
  0x19   : > { %p2065_p0 = pnand %p1690_p1, %p45_p4  ;;  %s2532_s3 = sld [smem:[#allocation22_spill]] }
  0x1a   : > { %s1943_s26 = smov 64   ;;  %s1944_s28 = smov 4  }
  0x1b   : > { %s197_s14 = sshll.u32 %s2530_s1, 4  ;;  %s1945_s29 = smov [#allocation7]   ;;  %s198_s14 = int_to_ptr.hbm [resolvable:$true] %s197_s14 }
  0x1c   : > { %1693 = dma.hbm_to_vmem [thread:$0]  (!%p2065_p0), %s198_s14, 1280, %s200_s16, [#allocation6], %s1943_s26, %s1943_s26, %s1944_s28  }
  0x1d   : > { %s216_s12 = sshll.u32 %s1945_s29, 4  ;;  %s228_s1 = sshll.u32 %s2514_s4, 4  ;;  %s217_s12 = int_to_ptr.vmem [resolvable:$true] %s216_s12  ;;  %s229_s1 = int_to_ptr.hbm [resolvable:$true] %s228_s1 }
  0x1e   : > { %s1946_s30 = smov 16   ;;  %s1947_s27 = smov 1  }
  0x1f   : > { %s214_s20 = sshll.u32 %s2532_s3, 4  ;;  %s1948_s18 = smov [#allocation8]   ;;  %s215_s20 = int_to_ptr.hbm [resolvable:$true] %s214_s20 }
  0x20   : > { %1696 = dma.hbm_to_vmem [thread:$0]  (!%p2065_p0), %s215_s20, 224, %s217_s12, [#allocation6], %s1946_s30, %s1946_s30, %s1947_s27  }
  0x21   : > { %s230_s19 = sshll.u32 %s1948_s18, 4  ;;  %s1949_s3 = smov 128   ;;  %s231_s19 = int_to_ptr.vmem [resolvable:$true] %s230_s19 }
  0x22   : > { %s1950_s10 = smov 8   ;;  %p1432_p2 = scmp.ge.s32.totalorder %s1940_s24, 2 }
  0x23   : > { %1699 = dma.hbm_to_vmem [thread:$0]  (!%p2065_p0), %s229_s1, 2048, %s231_s19, [#allocation9], %s1949_s3, %s1949_s3, %s1950_s10  }
  0x24   : > { %243 = sbr.rel (%p1432_p2) target bundleno = 55 (0x37), region = 36 }
  0x29   : > { %s247_s14 = sand.u32 1, %s1936_s23   ;;  %s1629_s27 = sshll.u32 %s1940_s24, 3 }
  0x2a   : > { %s1665_s30 = smul.u32 144, %s247_s14  ;;  %s256_s17 = scalar_lea.hbm %s2510_s0, %s1629_s27 }
  0x2b   : > { %s269_s1 = sshll.u32 %s256_s17, 4  ;;  %s1951_s29 = smov 256   ;;  %s270_s1 = int_to_ptr.hbm [resolvable:$true] %s269_s1 }
  0x2c   : > { %s1673_s3 = scalar_select %p2033_p5, [#allocation0], [#allocation13] }
  0x2d   : > { %s251_s10 = scalar_lea.vmem [#allocation2], %s1665_s30  ;;  %1674 = sst [smem:[#allocation12]] (%p2033_p5), %s1951_s29 }
  0x2e   : > { %s271_s26 = sshll.u32 %s251_s10, 4  ;;  %s261_s28 = sld [smem:[%s1673_s3]]   ;;  %s272_s26 = int_to_ptr.vmem [resolvable:$true] %s271_s26 }
  0x2f   : > { %s1952_s12 = smov 128   ;;  %s1953_s13 = smov 2  }
  0x30   : > { %1675 = sst [smem:[#allocation12 + $0x1]] (%p2033_p5), %s1952_s12  ;;  %s1954_s15 = smov 64  }
  0x31   : > { %1676 = sst [smem:[#allocation12 + $0x2]] (%p2033_p5), %s1953_s13  ;;  %s1955_s19 = smov 4  }
  0x32   : > { %1677 = sst [smem:[#allocation12 + $0x3]] (%p2033_p5), %s1954_s15  ;;  %s248_s30 = scalar_lea.sflag [#allocation3], %s247_s14 }
  0x33   : > { %1678 = sst [smem:[#allocation12 + $0x4]] (%p2033_p5), %s1954_s15  ;;  %s1956_s16 = smov [#allocation11]  }
  0x34   : > { %s1435_s18 = sshll.u32 %s261_s28, 26  ;;  %1679 = sst [smem:[#allocation12 + $0x5]] (%p2033_p5), %s1955_s19 }
  0x35   : > { %s1436_s27 = sadd.s32 134217728, %s1435_s18 }
  0x36   : > { %1680 = dma.general (%p2033_p5), %s270_s1, 2304, %s272_s26, %s248_s30, %s1956_s16, [#allocation12], %s1436_s27, 0  }
  0x37 PF: > { %296 = sbr.rel (%p2054_p13) target bundleno = 633 (0x279), region = 44  ;;  %s2108_s20 = sand.u32 (!%p2054_p13), 1, %s1932_s22  }
  0x38   : > { %s1666_s17 = smul.u32 (!%p2054_p13), 144, %s2108_s20  ;;  %s299_s3 = scalar_lea.sflag (!%p2054_p13), [#allocation3], %s2108_s20 }
  0x3a   : > { %s2112_s10 = scalar_lea.vmem (!%p2054_p13), [#allocation2], %s1666_s17 }
  0x3c   : > { %1911 = dma.done.wait (%p2039_p6), %s299_s3, 2304  }
  0x3d   : > { %1913 = vsyncadd (%p2039_p6), %s299_s3, 4294964992 }
  0x3e   : > { %1915 = dma.done.wait (%p45_p4), [#allocation6], 1504  }
  0x3f   : > { %1917 = vsyncadd (%p45_p4), [#allocation6], 4294965792 }
  0x40   : > { %1919 = dma.done.wait (%p45_p4), [#allocation9], 2048  }
  0x41   : > { %1921 = vsyncadd (%p45_p4), [#allocation9], 4294965248  ;;  %v1651_v0 = vld [vmem:[#allocation5 + $0x18] sm:$0xff]  ;;  %v1650_v1 = vld [vmem:[#allocation5 + $0x10] sm:$0xff]  ;;  %vm477_vm0 = vcmask 261120   ;;  %s1441_s11 = sshll.u32 %s2108_s20, 4 }
  0x42   : > { %1659 = vmatpush.bf16.msra.mxu1 %v1651_v0  ;;  %1660 = vmatpush.bf16.msra.mxu2 %v1651_v0  ;;  %v2127_v2 = vld [vmem:[%s2112_s10 + $0x28] sm:$0xff]  ;;  %v2130_v3 = vld [vmem:[%s2112_s10 + $0x38] sm:$0xff]  ;;  %v1652_v10 = vld [vmem:[#allocation5 + $0x20] sm:$0xff]  ;;  %s1658_s26 = sshll.u32 %s2015_s25, 4  ;;  %s346_s13 = scalar_lea.vmem [#allocation10], %s1441_s11 }
  0x43   : > { %1661 = vmatpush.bf16.msra.mxu3 %v1651_v0  ;;  %526 = vmatpush.bf16.msra.mxu0 %v1651_v0  ;;  %v2133_v4 = vld [vmem:[%s2112_s10 + $0x58] sm:$0xff]  ;;  %v1631_v6 = vld [vmem:[%s2112_s10 + $0x8] sm:$0xff]  ;;  %v1654_v11 = vld [vmem:[#allocation5 + $0x30] sm:$0xff]  ;;  %s1321_s12 = scalar_lea.hbm %s2516_s6, %s1658_s26  ;;  %s1322_s15 = sshll.u32 %s346_s13, 4  ;;  %s1323_s15 = int_to_ptr.vmem [resolvable:$true] %s1322_s15 }
  0x44   : > { %v1653_v5 = vld [vmem:[#allocation5 + $0x28] sm:$0xff]  ;;  %v1655_v7 = vld [vmem:[#allocation5 + $0x38] sm:$0xff]  ;;  %v1648_v12 = vld [vmem:[#allocation5] sm:$0xff]  ;;  %s1324_s18 = sshll.u32 %s1321_s12, 4  ;;  %s1310_s19 = scalar_lea.sflag [#allocation4], %s2108_s20  ;;  %s1325_s18 = int_to_ptr.hbm [resolvable:$true] %s1324_s18 }
  0x45   : > { %v1657_v8 = vld [vmem:[#allocation5 + $0x48] sm:$0xff]  ;;  %v1656_v13 = vld [vmem:[#allocation5 + $0x40] sm:$0xff]  ;;  %v1279_v54 = vld [vmem:[#allocation8 + $0x78] sm:$0xff]  ;;  %s1880_s27 = sshra.s32 %s1325_s18, 4  ;;  %s1886_s17 = scalar_lea.hbm %s2516_s6, 32  ;;  %s1881_s27 = int_to_ptr.hbm [resolvable:$true] %s1880_s27 }
  0x46   : > { %v1649_v9 = vld [vmem:[#allocation5 + $0x8] sm:$0xff]  ;;  %1662 = vmatpush.bf16.msra.mxu1 %v1650_v1  ;;  %1663 = vmatpush.bf16.msra.mxu2 %v1650_v1  ;;  %v1636_v14 = vld [vmem:[%s2112_s10 + $0x30] sm:$0xff]  ;;  %v2145_v15 = vld [vmem:[%s2112_s10 + $0x40] sm:$0xff]  ;;  %s1882_s25 = scalar_lea.hbm %s1881_s27, 16  ;;  %p1887_p6 = scmp.lt.s32.totalorder %s1881_s27, %s2516_s6 }
  0x47   : > { %1664 = vmatpush.bf16.msra.mxu3 %v1650_v1  ;;  %527 = vmatpush.bf16.msra.mxu0 %v1650_v1  ;;  %v2148_v16 = vld [vmem:[%s2112_s10 + $0x60] sm:$0xff]  ;;  %v1632_v17 = vld [vmem:[%s2112_s10 + $0x10] sm:$0xff]  ;;  %v2158_v18 = vld [vmem:[%s2112_s10 + $0x48] sm:$0xff]  ;;  %p1883_p3 = scmp.ne.s32.totalorder %s1881_s27, %s1882_s25  ;;  %p1888_p7 = scmp.lt.s32.totalorder %s1886_s17, %s1882_s25 }
  0x48   : > { %v1630_v19 = vld [vmem:[%s2112_s10] sm:$0xff]  ;;  %v2162_v20 = vld [vmem:[%s2112_s10 + $0x68] sm:$0xff]  ;;  %v1633_v21 = vld [vmem:[%s2112_s10 + $0x18] sm:$0xff] }
  0x49   : > { %1510 = vmatmul.msk.bf16.vlgmr.msra.gmra.mxu1 %vm477_vm0, %v2127_v2  ;;  %1512 = vmatmul.msk.bf16.vlgmr.msra.gmra.mxu2 %vm477_vm0, %v2130_v3  ;;  %v2172_v22 = vld [vmem:[%s2112_s10 + $0x50] sm:$0xff]  ;;  %v1634_v24 = vld [vmem:[%s2112_s10 + $0x20] sm:$0xff]  ;;  %p1884_p4 = pnand %p1883_p3, %p2046_p11  ;;  %p1889_p8 = por %p1888_p7, %p1887_p6 }
  0x4a   : > { %729 = vmatpush.bf16.msrb.mxu2 %v1653_v5  ;;  %1516 = vmatmul.msk.bf16.vlgmr.msra.gmra.mxu3 %vm477_vm0, %v2133_v4  ;;  %v2175_v23 = vld [vmem:[%s2112_s10 + $0x70] sm:$0xff] }
  0x4b   : > { %861 = vmatpush.bf16.msrb.mxu3 %v1655_v7  ;;  %1506 = vmatmul.msk.bf16.vlgmr.msra.gmra.mxu0 %vm477_vm0, %v1631_v6  ;;  %v1278_v60 = vld [vmem:[#allocation8 + $0x70] sm:$0xff]  ;;  %p1885_p5 = pneg %p1884_p4 }
  0x4c   : > { %993 = vmatpush.bf16.msrb.mxu0 %v1657_v8  ;;  %625 = vmatpush.bf16.msrb.mxu1 %v1649_v9  ;;  %v1277_v8 = vld [vmem:[#allocation8 + $0x68] sm:$0xff] }
  0x4d   : > { %p1890_p9 = pnand %p1889_p8, %p1885_p5 }
  0x4e   : > { %730 = vmatpush.bf16.msrb.mxu2 %v1652_v10 }
  0x4f   : > { %862 = vmatpush.bf16.msrb.mxu3 %v1654_v11 }
  0x50   : > { %626 = vmatpush.bf16.msrb.mxu1 %v1648_v12  ;;  %994 = vmatpush.bf16.msrb.mxu0 %v1656_v13 }
  0x54   : > { %1284 = vmatpush.msra.mxu1 %v1279_v54 }
  0x56   : > { %1285 = vmatpush.msra.mxu1 %v1278_v60 }
  0x58   : > { %1286 = vmatpush.msra.mxu1 %v1277_v8 }
  0x59   : > { %1511 = vmatmul.msk.bf16.gmra.mxu1 %vm477_vm0, %v1636_v14  ;;  %1513 = vmatmul.msk.bf16.gmra.mxu2 %vm477_vm0, %v2145_v15 }
  0x5a   : > { %1517 = vmatmul.msk.bf16.gmra.mxu3 %vm477_vm0, %v2148_v16 }
  0x5b   : > { %1507 = vmatmul.msk.bf16.gmra.mxu0 %vm477_vm0, %v1632_v17 }
  0x69   : > { %1514 = vmatmul.msk.bf16.gmra.mxu2 %vm477_vm0, %v2158_v18  ;;  %1532 = vmatmul.msk.bf16.vlgmr.msrb.gmra.mxu1 %vm477_vm0, %v1630_v19 }
  0x6a   : > { %1518 = vmatmul.msk.bf16.gmra.mxu3 %vm477_vm0, %v2162_v20 }
  0x6b   : > { %1508 = vmatmul.msk.bf16.gmra.mxu0 %vm477_vm0, %v1633_v21 }
  0x79   : > { %1515 = vmatmul.msk.bf16.gmra.mxu2 %vm477_vm0, %v2172_v22  ;;  %1533 = vmatmul.msk.bf16.gmra.mxu1 %vm477_vm0, %v1631_v6 }
  0x7a   : > { %1519 = vmatmul.msk.bf16.gmra.mxu3 %vm477_vm0, %v2175_v23 }
  0x7b   : > { %1509 = vmatmul.msk.bf16.gmra.mxu0 %vm477_vm0, %v1634_v24 }
  0x89   : > { %1534 = vmatmul.msk.bf16.gmra.mxu1 %vm477_vm0, %v1632_v17  ;;  %1558 = vmatmul.msk.bf16.vlgmr.msrb.gmra.mxu2 %vm477_vm0, %v1632_v17 }
  0x8a   : > { %1584 = vmatmul.msk.bf16.vlgmr.msrb.gmra.mxu3 %vm477_vm0, %v1633_v21 }
  0x8b   : > { %1610 = vmatmul.msk.bf16.vlgmr.msrb.gmra.mxu0 %vm477_vm0, %v1634_v24 }
  0x99   : > { %1535 = vmatmul.msk.bf16.gmra.mxu1 %vm477_vm0, %v1633_v21  ;;  %1559 = vmatmul.msk.bf16.gmra.mxu2 %vm477_vm0, %v1633_v21 }
  0x9a   : > { %1585 = vmatmul.msk.bf16.gmra.mxu3 %vm477_vm0, %v1634_v24 }
  0x9b   : > { %1611 = vmatmul.msk.bf16.gmra.mxu0 %vm477_vm0, %v2127_v2 }
  0xa9   : > { %1536 = vmatmul.msk.bf16.gmra.mxu1 %vm477_vm0, %v1634_v24  ;;  %1560 = vmatmul.msk.bf16.gmra.mxu2 %vm477_vm0, %v1634_v24 }
  0xaa   : > { %1586 = vmatmul.msk.bf16.gmra.mxu3 %vm477_vm0, %v2127_v2 }
  0xab   : > { %1612 = vmatmul.msk.bf16.gmra.mxu0 %vm477_vm0, %v1636_v14 }
  0xb9   : > { %1537 = vmatmul.msk.bf16.gmra.mxu1 %vm477_vm0, %v2127_v2  ;;  %1561 = vmatmul.msk.bf16.gmra.mxu2 %vm477_vm0, %v2127_v2 }
  0xba   : > { %1587 = vmatmul.msk.bf16.gmra.mxu3 %vm477_vm0, %v1636_v14 }
  0xbb   : > { %1613 = vmatmul.msk.bf16.gmra.mxu0 %vm477_vm0, %v2130_v3 }
  0xc6   : > { %v2205_v25 = vpop.f32.mrf.mxu1 }
  0xc8   : > { %v529_v26 = vpop.f32.mrf.mxu0 }
  0xc9   : > { %1538 = vmatmul.msk.bf16.gmra.mxu1 %vm477_vm0, %v1636_v14  ;;  %1562 = vmatmul.msk.bf16.gmra.mxu2 %vm477_vm0, %v1636_v14 }
  0xca   : > { %1588 = vmatmul.msk.bf16.gmra.mxu3 %vm477_vm0, %v2130_v3 }
  0xcb   : > { %1614 = vmatmul.msk.bf16.gmra.mxu0 %vm477_vm0, %v2145_v15 }
  0xcc   : > { %v2213_v27 = vpop.f32.mrf.mxu2 }
  0xcd   : > { %v2215_v28 = vpop.f32.mrf.mxu3 }
  0xce   : > { %v2217_v29 = vpop.f32.mrf.mxu1 }
  0xd0   : > { %v531_v30 = vpop.f32.mrf.mxu0 }
  0xd4   : > { %v2219_v31 = vpop.f32.mrf.mxu2 }
  0xd5   : > { %v2221_v32 = vpop.f32.mrf.mxu3 }
  0xd6   : > { %v2223_v33 = vpop.f32.mrf.mxu1 }
  0xd8   : > { %v534_v34 = vpop.f32.mrf.mxu0 }
  0xd9   : > { %1539 = vmatmul.msk.bf16.gmra.mxu1 %vm477_vm0, %v2130_v3  ;;  %1563 = vmatmul.msk.bf16.gmra.mxu2 %vm477_vm0, %v2130_v3 }
  0xda   : > { %1589 = vmatmul.msk.bf16.gmra.mxu3 %vm477_vm0, %v2145_v15 }
  0xdb   : > { %1615 = vmatmul.msk.bf16.gmra.mxu0 %vm477_vm0, %v2158_v18 }
  0xdc   : > { %v2233_v35 = vpop.f32.mrf.mxu2 }
  0xdd   : > { %v2235_v36 = vpop.f32.mrf.mxu3 }
  0xde   : > { %v2237_v37 = vpop.f32.mrf.mxu1 }
  0xe0   : > { %v536_v38 = vpop.f32.mrf.mxu0 }
  0xe4   : > { %v2239_v39 = vpop.f32.mrf.mxu2 }
  0xe5   : > { %v2241_v40 = vpop.f32.mrf.mxu3 }
  0xe6   : > { %v628_v41 = vpop.f32.mrf.mxu1 }
  0xe7   : > { %v629_v42 = vadd.f32 %v628_v41, %v529_v26  ;;  %v1276_v41 = vld [vmem:[#allocation8 + $0x60] sm:$0xff] }
  0xe8   : > { %v2243_v43 = vpop.f32.mrf.mxu0  ;;  %1287 = vmatpush.msra.mxu1 %v1276_v41 }
  0xe9   : > { %1540 = vmatmul.msk.bf16.gmra.mxu1 %vm477_vm0, %v2145_v15  ;;  %1564 = vmatmul.msk.bf16.gmra.mxu2 %vm477_vm0, %v2145_v15 }
  0xea   : > { %1590 = vmatmul.msk.bf16.gmra.mxu3 %vm477_vm0, %v2158_v18 }
  0xeb   : > { %1616 = vmatmul.msk.bf16.gmra.mxu0 %vm477_vm0, %v2172_v22 }
  0xec   : > { %v2253_v44 = vpop.f32.mrf.mxu2 }
  0xed   : > { %v2255_v45 = vpop.f32.mrf.mxu3 }
  0xee   : > { %v630_v46 = vpop.f32.mrf.mxu1 }
  0xef   : > { %v631_v47 = vadd.f32 %v630_v46, %v531_v30 }
  0xf0   : > { %v2257_v48 = vpop.f32.mrf.mxu0 }
  0xf4   : > { %v2259_v49 = vpop.f32.mrf.mxu2 }
  0xf5   : > { %v2261_v50 = vpop.f32.mrf.mxu3 }
  0xf6   : > { %v633_v51 = vpop.f32.mrf.mxu1 }
  0xf7   : > { %v634_v52 = vadd.f32 %v633_v51, %v534_v34 }
  0xf8   : > { %v544_v53 = vpop.f32.mrf.mxu0 }
  0xf9   : > { %1541 = vmatmul.msk.bf16.gmra.mxu1 %vm477_vm0, %v2158_v18  ;;  %1565 = vmatmul.msk.bf16.gmra.mxu2 %vm477_vm0, %v2158_v18 }
  0xfa   : > { %1591 = vmatmul.msk.bf16.gmra.mxu3 %vm477_vm0, %v2172_v22 }
  0xfb   : > { %1617 = vmatmul.msk.bf16.gmra.mxu0 %vm477_vm0, %v2133_v4 }
  0xfc   : > { %v2271_v55 = vpop.f32.mrf.mxu2 }
  0xfd   : > { %v2273_v56 = vpop.f32.mrf.mxu3 }
  0xfe   : > { %v635_v57 = vpop.f32.mrf.mxu1 }
  0xff   : > { %v636_v58 = vadd.f32 %v635_v57, %v536_v38  ;;  %v2315_v57 = vld [vmem:[%s2512_s2] ss:$0 sm:$0xff] }
 0x100   : > { %v546_v59 = vpop.f32.mrf.mxu0 }
 0x104   : > { %v2275_v61 = vpop.f32.mrf.mxu2 }
 0x105   : > { %v2277_v62 = vpop.f32.mrf.mxu3 }
 0x106   : > { %v638_v63 = vpop.f32.mrf.mxu1 }
 0x108   : > { %v996_v0 = vpop.f32.mrf.mxu0 }
 0x109   : > { %1542 = vmatmul.msk.bf16.gmra.mxu1 %vm477_vm0, %v2172_v22  ;;  %1566 = vmatmul.msk.bf16.gmra.mxu2 %vm477_vm0, %v2172_v22 }
 0x10a   : > { %1592 = vmatmul.msk.bf16.gmra.mxu3 %vm477_vm0, %v2133_v4 }
 0x10b   : > { %1618 = vmatmul.msk.bf16.gmra.mxu0 %vm477_vm0, %v2148_v16 }
 0x10c   : > { %v732_v1 = vpop.f32.mrf.mxu2 }
 0x10d   : > { %v802_v2 = vadd.f32 %v732_v1, %v629_v42  ;;  %v864_v3 = vpop.f32.mrf.mxu3 }
 0x10e   : > { %v640_v5 = vpop.f32.mrf.mxu1 }
 0x10f   : > { %v934_v6 = vadd.f32 %v864_v3, %v802_v2 }
 0x110   : > { %v998_v7 = vpop.f32.mrf.mxu0 }
 0x111   : > { %v1066_v9 = vadd.f32 %v996_v0, %v934_v6  ;;  %v1275_v6 = vld [vmem:[#allocation8 + $0x58] sm:$0xff] }
 0x112   : > { %1288 = vmatpush.msra.mxu1 %v1275_v6  ;;  %v1764_v6 = vld [vmem:[#allocation7 + $0x3] ss:$0 sm:$0xff] }
 0x114   : > { %v734_v10 = vpop.f32.mrf.mxu2 }
 0x115   : > { %v803_v11 = vadd.f32 %v734_v10, %v631_v47  ;;  %v866_v12 = vpop.f32.mrf.mxu3  ;;  %v1763_v10 = vld [vmem:[#allocation7 + $0x2] ss:$0 sm:$0xff] }
 0x116   : > { %v643_v13 = vpop.f32.mrf.mxu1 }
 0x117   : > { %v935_v14 = vadd.f32 %v866_v12, %v803_v11  ;;  %v2287_v15 = vadd.f32 %v643_v13, %v544_v53 }
 0x118   : > { %v1001_v17 = vpop.f32.mrf.mxu0 }
 0x119   : > { %v1067_v18 = vadd.f32 %v998_v7, %v935_v14  ;;  %1543 = vmatmul.msk.bf16.gmra.mxu1 %vm477_vm0, %v2133_v4  ;;  %1567 = vmatmul.msk.bf16.gmra.mxu2 %vm477_vm0, %v2133_v4 }
 0x11a   : > { %1593 = vmatmul.msk.bf16.gmra.mxu3 %vm477_vm0, %v2148_v16 }
 0x11b   : > { %1619 = vmatmul.msk.bf16.gmra.mxu0 %vm477_vm0, %v2162_v20 }
 0x11c   : > { %v737_v19 = vpop.f32.mrf.mxu2 }
 0x11d   : > { %v804_v21 = vadd.f32 %v737_v19, %v634_v52  ;;  %v869_v22 = vpop.f32.mrf.mxu3  ;;  %v639_v52 = vadd.f32 %v638_v63, %v2243_v43  ;;  %v1761_v43 = vld [vmem:[#allocation7] ss:$0 sm:$0xff]  ;;  %v641_v63 = vadd.f32 %v640_v5, %v2257_v48 }
 0x11e   : > { %v645_v24 = vpop.f32.mrf.mxu1 }
 0x11f   : > { %v936_v26 = vadd.f32 %v869_v22, %v804_v21  ;;  %v2297_v30 = vadd.f32 %v645_v24, %v546_v59  ;;  %v1099_v21 = vadd.f32 %v2315_v57, %v1067_v18 }
 0x120   : > { %v1003_v34 = vpop.f32.mrf.mxu0 }
 0x121   : > { %v1068_v38 = vadd.f32 %v1001_v17, %v936_v26  ;;  %v1127_v18 = vmax.f32 %v1099_v21, 0.0 }
 0x124   : > { %v739_v42 = vpop.f32.mrf.mxu2 }
 0x125   : > { %v805_v46 = vadd.f32 %v739_v42, %v636_v58  ;;  %v871_v4 = vpop.f32.mrf.mxu3 }
 0x126   : > { %v2299_v47 = vpop.f32.mrf.mxu1 }
 0x127   : > { %v937_v51 = vadd.f32 %v871_v4, %v805_v46 }
 0x128   : > { %v1006_v53 = vpop.f32.mrf.mxu0 }
 0x129   : > { %v2301_v54 = vadd.f32 %v1003_v34, %v937_v51  ;;  %1544 = vmatmul.msk.bf16.gmra.mxu1 %vm477_vm0, %v2148_v16  ;;  %1568 = vmatmul.msk.bf16.gmra.mxu2 %vm477_vm0, %v2148_v16  ;;  %v1098_v16 = vadd.f32 %v2315_v57, %v1066_v9  ;;  %v2325_v9 = vld [vmem:[%s2112_s10 + $0x78] sm:$0xff] }
 0x12a   : > { %1594 = vmatmul.msk.bf16.gmra.mxu3 %vm477_vm0, %v2162_v20  ;;  %v1274_v34 = vld [vmem:[#allocation8 + $0x50] sm:$0xff] }
 0x12b   : > { %1620 = vmatmul.msk.bf16.gmra.mxu0 %vm477_vm0, %v2175_v23  ;;  %v1126_v7 = vmax.f32 %v1098_v16, 0.0  ;;  %1289 = vmatpush.msra.mxu1 %v1274_v34 }
 0x12c   : > { %v742_v58 = vpop.f32.mrf.mxu2 }
 0x12d   : > { %v806_v59 = vadd.f32 %v742_v58, %v639_v52  ;;  %v874_v60 = vpop.f32.mrf.mxu3  ;;  %v2327_v19 = vmul.f32 %v1761_v43, %v1126_v7 }
 0x12e   : > { %v2317_v0 = vpop.f32.mrf.mxu1 }
 0x12f   : > { %v938_v1 = vadd.f32 %v874_v60, %v806_v59 }
 0x130   : > { %v1008_v2 = vpop.f32.mrf.mxu0 }
 0x131   : > { %v1070_v3 = vadd.f32 %v1006_v53, %v938_v1  ;;  %v2344_v53 = vmul.f32 %v1761_v43, %v1127_v18 }
 0x133   : > { %v1102_v8 = vadd.f32 %v2315_v57, %v1070_v3  ;;  %v1762_v3 = vld [vmem:[#allocation7 + $0x1] ss:$0 sm:$0xff] }
 0x134   : > { %v744_v11 = vpop.f32.mrf.mxu2 }
 0x135   : > { %v1130_v12 = vmax.f32 %v1102_v8, 0.0  ;;  %v807_v13 = vadd.f32 %v744_v11, %v641_v63  ;;  %v876_v14 = vpop.f32.mrf.mxu3  ;;  %v1646_v8 = vld [vmem:[%s2112_s10 + $0x80] sm:$0xff]  ;;  %v1101_v11 = vadd.f32 %v2315_v57, %v2301_v54 }
 0x136   : > { %v2322_v17 = vpop.f32.mrf.mxu1 }
 0x137   : > { %v2330_v22 = vmul.f32 %v1763_v10, %v1130_v12  ;;  %v939_v24 = vadd.f32 %v876_v14, %v807_v13  ;;  %v1129_v54 = vmax.f32 %v1101_v11, 0.0 }
 0x138   : > { %v1011_v26 = vpop.f32.mrf.mxu0 }
 0x139   : > { %v1238_v48 = vmax.f32 %v2327_v19, %v2330_v22  ;;  %v1071_v5 = vadd.f32 %v1008_v2, %v939_v24  ;;  %1545 = vmatmul.msk.bf16.gmra.mxu1 %vm477_vm0, %v2162_v20  ;;  %1569 = vmatmul.msk.bf16.gmra.mxu2 %vm477_vm0, %v2162_v20  ;;  %v1100_v20 = vadd.f32 %v2315_v57, %v1068_v38 }
 0x13a   : > { %1595 = vmatmul.msk.bf16.gmra.mxu3 %vm477_vm0, %v2175_v23 }
 0x13b   : > { %1621 = vmatmul.msk.bf16.gmra.mxu0 %vm477_vm0, %v2325_v9  ;;  %v1103_v41 = vadd.f32 %v2315_v57, %v1071_v5  ;;  %v1128_v2 = vmax.f32 %v1100_v20, 0.0  ;;  %v649_v5 = vadd.f32 %v2299_v47, %v2205_v25  ;;  %v1765_v25 = vld [vmem:[#allocation7 + $0x4] ss:$0 sm:$0xff] }
 0x13c   : > { %v747_v42 = vpop.f32.mrf.mxu2 }
 0x13d   : > { %v1131_v46 = vmax.f32 %v1103_v41, 0.0  ;;  %v808_v4 = vadd.f32 %v747_v42, %v2287_v15  ;;  %v879_v51 = vpop.f32.mrf.mxu3 }
 0x13e   : > { %v2349_v60 = vpop.f32.mrf.mxu1 }
 0x13f   : > { %v2347_v52 = vmul.f32 %v1763_v10, %v1131_v46  ;;  %v940_v58 = vadd.f32 %v879_v51, %v808_v4  ;;  %v2356_v10 = vmul.f32 %v1762_v3, %v1128_v2  ;;  %v1213_v46 = vmul.f32 %v1762_v3, %v1129_v54 }
 0x140   : > { %v1013_v59 = vpop.f32.mrf.mxu0 }
 0x141   : > { %v1251_v16 = vmax.f32 %v2344_v53, %v2347_v52  ;;  %v1072_v1 = vadd.f32 %v1011_v26, %v940_v58  ;;  %v1273_v26 = vld [vmem:[#allocation8 + $0x48] sm:$0xff] }
 0x142   : > { %1290 = vmatpush.msra.mxu1 %v1273_v26 }
 0x143   : > { %v1104_v15 = vadd.f32 %v2315_v57, %v1072_v1  ;;  %v651_v1 = vadd.f32 %v2317_v0, %v2217_v29  ;;  %v1272_v29 = vld [vmem:[#allocation8 + $0x40] sm:$0xff]  ;;  %v654_v0 = vadd.f32 %v2322_v17, %v2223_v33  ;;  %v656_v33 = vadd.f32 %v2349_v60, %v2237_v37 }
 0x144   : > { %v749_v7 = vpop.f32.mrf.mxu2  ;;  %1291 = vmatpush.msra.mxu1 %v1272_v29 }
 0x145   : > { %v1132_v43 = vmax.f32 %v1104_v15, 0.0  ;;  %v809_v63 = vadd.f32 %v749_v7, %v2297_v30  ;;  %v881_v38 = vpop.f32.mrf.mxu3 }
 0x146   : > { %v2366_v30 = vpop.f32.mrf.mxu1 }
 0x147   : > { %v2360_v12 = vmul.f32 %v1764_v6, %v1132_v43  ;;  %v941_v13 = vadd.f32 %v881_v38, %v809_v63  ;;  %v1647_v38 = vld [vmem:[%s2112_s10 + $0x88] sm:$0xff]  ;;  %v659_v37 = vadd.f32 %v2366_v30, %v2213_v27  ;;  %v1767_v27 = vld [vmem:[#allocation7 + $0x6] ss:$0 sm:$0xff] }
 0x148   : > { %v1016_v14 = vpop.f32.mrf.mxu0 }
 0x149   : > { %v1239_v21 = vmax.f32 %v2356_v10, %v2360_v12  ;;  %v1073_v24 = vadd.f32 %v1013_v59, %v941_v13  ;;  %1570 = vmatmul.msk.bf16.gmra.mxu2 %vm477_vm0, %v2175_v23  ;;  %v1270_v12 = vld [vmem:[#allocation8 + $0x30] sm:$0xff] }
 0x14a   : > { %1596 = vmatmul.msk.bf16.gmra.mxu3 %vm477_vm0, %v2325_v9 }
 0x14b   : > { %1622 = vmatmul.msk.bf16.gmra.mxu0 %vm477_vm0, %v1646_v8  ;;  %v1105_v34 = vadd.f32 %v2315_v57, %v1073_v24 }
 0x14c   : > { %v752_v18 = vpop.f32.mrf.mxu2 }
 0x14d   : > { %v1133_v41 = vmax.f32 %v1105_v34, 0.0  ;;  %v810_v42 = vadd.f32 %v752_v18, %v649_v5  ;;  %v884_v23 = vpop.f32.mrf.mxu3 }
 0x14e   : > { %v660_v47 = vpop.f32.mrf.mxu1 }
 0x14f   : > { %v1217_v4 = vmul.f32 %v1764_v6, %v1133_v41  ;;  %v942_v51 = vadd.f32 %v884_v23, %v810_v42  ;;  %v1766_v41 = vld [vmem:[#allocation7 + $0x5] ss:$0 sm:$0xff] }
 0x150   : > { %v1018_v20 = vpop.f32.mrf.mxu0 }
 0x151   : > { %v1252_v58 = vmax.f32 %v1213_v46, %v1217_v4  ;;  %v1074_v59 = vadd.f32 %v1016_v14, %v942_v51 }
 0x153   : > { %v1106_v2 = vadd.f32 %v2315_v57, %v1074_v59 }
 0x154   : > { %v754_v15 = vpop.f32.mrf.mxu2 }
 0x155   : > { %v1134_v7 = vmax.f32 %v1106_v2, 0.0  ;;  %v811_v43 = vadd.f32 %v754_v15, %v651_v1  ;;  %v886_v63 = vpop.f32.mrf.mxu3 }
 0x157   : > { %v1218_v11 = vmul.f32 %v1765_v25, %v1134_v7  ;;  %v943_v13 = vadd.f32 %v886_v63, %v811_v43 }
 0x158   : > { %v1021_v3 = vpop.f32.mrf.mxu0 }
 0x159   : > { %v2381_v6 = vmax.f32 %v1238_v48, %v1218_v11  ;;  %v1075_v14 = vadd.f32 %v1018_v20, %v943_v13  ;;  %1571 = vmatmul.msk.bf16.gmra.mxu2 %vm477_vm0, %v2325_v9  ;;  %v663_v48 = vpop.f32.mrf.mxu1  ;;  %v661_v13 = vadd.f32 %v660_v47, %v2219_v31 }
 0x15a   : > { %1597 = vmatmul.msk.bf16.gmra.mxu3 %vm477_vm0, %v1646_v8 }
 0x15b   : > { %1623 = vmatmul.msk.bf16.gmra.mxu0 %vm477_vm0, %v1647_v38  ;;  %v1107_v24 = vadd.f32 %v2315_v57, %v1075_v14 }
 0x15c   : > { %v757_v26 = vpop.f32.mrf.mxu2 }
 0x15d   : > { %v1135_v54 = vmax.f32 %v1107_v24, 0.0  ;;  %v812_v19 = vadd.f32 %v757_v26, %v654_v0  ;;  %v889_v22 = vpop.f32.mrf.mxu3 }
 0x15f   : > { %v1219_v5 = vmul.f32 %v1765_v25, %v1135_v54  ;;  %v944_v34 = vadd.f32 %v889_v22, %v812_v19  ;;  %v664_v22 = vadd.f32 %v663_v48, %v2233_v35  ;;  %v1768_v35 = vld [vmem:[#allocation7 + $0x7] ss:$0 sm:$0xff] }
 0x160   : > { %v1023_v18 = vpop.f32.mrf.mxu0 }
 0x161   : > { %v2393_v9 = vmax.f32 %v1251_v16, %v1219_v5  ;;  %v1076_v8 = vadd.f32 %v1021_v3, %v944_v34  ;;  %v665_v1 = vpop.f32.mrf.mxu1  ;;  %v1271_v16 = vld [vmem:[#allocation8 + $0x38] sm:$0xff] }
 0x162   : > { %1292 = vmatpush.msra.mxu1 %v1271_v16 }
 0x163   : > { %v1108_v17 = vadd.f32 %v2315_v57, %v1076_v8 }
 0x164   : > { %v759_v42 = vpop.f32.mrf.mxu2  ;;  %1293 = vmatpush.msra.mxu1 %v1270_v12 }
 0x165   : > { %v1136_v23 = vmax.f32 %v1108_v17, 0.0  ;;  %v813_v46 = vadd.f32 %v759_v42, %v656_v33  ;;  %v891_v4 = vpop.f32.mrf.mxu3 }
 0x167   : > { %v1220_v51 = vmul.f32 %v1766_v41, %v1136_v23  ;;  %v945_v20 = vadd.f32 %v891_v4, %v813_v46  ;;  %v1269_v46 = vld [vmem:[#allocation8 + $0x28] sm:$0xff] }
 0x168   : > { %v1026_v59 = vpop.f32.mrf.mxu0  ;;  %1294 = vmatpush.msra.mxu1 %v1269_v46 }
 0x169   : > { %v2401_v53 = vmax.f32 %v1239_v21, %v1220_v51  ;;  %v1077_v52 = vadd.f32 %v1023_v18, %v945_v20  ;;  %v668_v21 = vpop.f32.mrf.mxu1 }
 0x16b   : > { %v1109_v60 = vadd.f32 %v2315_v57, %v1077_v52 }
 0x16c   : > { %v762_v2 = vpop.f32.mrf.mxu2 }
 0x16d   : > { %v1137_v25 = vmax.f32 %v1109_v60, 0.0  ;;  %v814_v15 = vadd.f32 %v762_v2, %v659_v37  ;;  %v894_v7 = vpop.f32.mrf.mxu3 }
 0x16f   : > { %v1221_v43 = vmul.f32 %v1766_v41, %v1137_v25  ;;  %v946_v63 = vadd.f32 %v894_v7, %v814_v15  ;;  %v669_v25 = vadd.f32 %v668_v21, %v2253_v44 }
 0x170   : > { %v1028_v38 = vpop.f32.mrf.mxu0 }
 0x171   : > { %v2406_v11 = vmax.f32 %v1252_v58, %v1221_v43  ;;  %v1078_v10 = vadd.f32 %v1026_v59, %v946_v63  ;;  %v670_v34 = vpop.f32.mrf.mxu1 }
 0x172   : > { %v671_v44 = vadd.f32 %v670_v34, %v2259_v49 }
 0x173   : > { %v1110_v3 = vadd.f32 %v2315_v57, %v1078_v10 }
 0x174   : > { %v764_v30 = vpop.f32.mrf.mxu2 }
 0x175   : > { %v1138_v14 = vmax.f32 %v1110_v3, 0.0  ;;  %v815_v29 = vadd.f32 %v764_v30, %v661_v13  ;;  %v896_v0 = vpop.f32.mrf.mxu3  ;;  %v1769_v30 = vld [vmem:[#allocation7 + $0x8] ss:$0 sm:$0xff] }
 0x177   : > { %v1222_v24 = vmul.f32 %v1767_v27, %v1138_v14  ;;  %v947_v26 = vadd.f32 %v896_v0, %v815_v29 }
 0x178   : > { %v1031_v54 = vpop.f32.mrf.mxu0 }
 0x179   : > { %v1242_v19 = vmax.f32 %v2381_v6, %v1222_v24  ;;  %v1079_v58 = vadd.f32 %v1028_v38, %v947_v26  ;;  %v666_v6 = vadd.f32 %v665_v1, %v2239_v39  ;;  %v2416_v52 = vpop.f32.mrf.mxu1 }
 0x17b   : > { %v1111_v5 = vadd.f32 %v2315_v57, %v1079_v58 }
 0x17c   : > { %v767_v18 = vpop.f32.mrf.mxu2 }
 0x17d   : > { %v1139_v31 = vmax.f32 %v1111_v5, 0.0  ;;  %v816_v47 = vadd.f32 %v767_v18, %v664_v22  ;;  %v899_v8 = vpop.f32.mrf.mxu3 }
 0x17f   : > { %v1223_v33 = vmul.f32 %v1767_v27, %v1139_v31  ;;  %v948_v17 = vadd.f32 %v899_v8, %v816_v47  ;;  %v1268_v27 = vld [vmem:[#allocation8 + $0x20] sm:$0xff] }
 0x180   : > { %v1033_v41 = vpop.f32.mrf.mxu0  ;;  %1295 = vmatpush.msra.mxu1 %v1268_v27 }
 0x181   : > { %v1255_v42 = vmax.f32 %v2393_v9, %v1223_v33  ;;  %v1080_v23 = vadd.f32 %v1031_v54, %v948_v17  ;;  %v2426_v12 = vpop.f32.mrf.mxu1  ;;  %v1267_v17 = vld [vmem:[#allocation8 + $0x18] sm:$0xff] }
 0x182   : > { %1296 = vmatpush.msra.mxu1 %v1267_v17 }
 0x183   : > { %v1112_v4 = vadd.f32 %v2315_v57, %v1080_v23 }
 0x184   : > { %v769_v48 = vpop.f32.mrf.mxu2 }
 0x185   : > { %v1140_v51 = vmax.f32 %v1112_v4, 0.0  ;;  %v817_v20 = vadd.f32 %v769_v48, %v666_v6  ;;  %v901_v59 = vpop.f32.mrf.mxu3 }
 0x187   : > { %v2418_v16 = vmul.f32 %v1768_v35, %v1140_v51  ;;  %v949_v37 = vadd.f32 %v901_v59, %v817_v20 }
 0x188   : > { %v1036_v60 = vpop.f32.mrf.mxu0 }
 0x189   : > { %v1243_v9 = vmax.f32 %v2401_v53, %v2418_v16  ;;  %v1081_v2 = vadd.f32 %v1033_v41, %v949_v37  ;;  %v678_v18 = vpop.f32.mrf.mxu1 }
 0x18a   : > { %v679_v27 = vadd.f32 %v678_v18, %v2215_v28 }
 0x18b   : > { %v1113_v39 = vadd.f32 %v2315_v57, %v1081_v2 }
 0x18c   : > { %v772_v1 = vpop.f32.mrf.mxu2 }
 0x18d   : > { %v1141_v15 = vmax.f32 %v1113_v39, 0.0  ;;  %v818_v7 = vadd.f32 %v772_v1, %v669_v25  ;;  %v904_v43 = vpop.f32.mrf.mxu3  ;;  %v1265_v25 = vld [vmem:[#allocation8 + $0x8] sm:$0xff] }
 0x18f   : > { %v2424_v63 = vmul.f32 %v1768_v35, %v1141_v15  ;;  %v950_v38 = vadd.f32 %v904_v43, %v818_v7 }
 0x190   : > { %v1038_v10 = vpop.f32.mrf.mxu0 }
 0x191   : > { %v1256_v13 = vmax.f32 %v2406_v11, %v2424_v63  ;;  %v1082_v3 = vadd.f32 %v1036_v60, %v950_v38  ;;  %v680_v23 = vpop.f32.mrf.mxu1  ;;  %v674_v38 = vadd.f32 %v2416_v52, %v2271_v55  ;;  %v676_v55 = vadd.f32 %v2426_v12, %v2275_v61 }
 0x192   : > { %v681_v28 = vadd.f32 %v680_v23, %v2221_v32 }
 0x193   : > { %v1114_v21 = vadd.f32 %v2315_v57, %v1082_v3  ;;  %v1264_v3 = vld [vmem:[#allocation8] sm:$0xff] }
 0x194   : > { %v774_v14 = vpop.f32.mrf.mxu2 }
 0x195   : > { %v1142_v29 = vmax.f32 %v1114_v21, 0.0  ;;  %v819_v0 = vadd.f32 %v774_v14, %v671_v44  ;;  %v906_v24 = vpop.f32.mrf.mxu3 }
 0x197   : > { %v1226_v26 = vmul.f32 %v1769_v30, %v1142_v29  ;;  %v951_v54 = vadd.f32 %v906_v24, %v819_v0 }
 0x198   : > { %v1041_v58 = vpop.f32.mrf.mxu0 }
 0x199   : > { %v2432_v22 = vmax.f32 %v1242_v19, %v1226_v26  ;;  %v1083_v5 = vadd.f32 %v1038_v10, %v951_v54  ;;  %v1266_v19 = vld [vmem:[#allocation8 + $0x10] sm:$0xff]  ;;  %v683_v51 = vpop.f32.mrf.mxu1 }
 0x19a   : > { %1297 = vmatpush.msra.mxu1 %v1266_v19  ;;  %v684_v14 = vadd.f32 %v683_v51, %v2235_v36 }
 0x19b   : > { %v1115_v31 = vadd.f32 %v2315_v57, %v1083_v5 }
 0x19c   : > { %v777_v47 = vpop.f32.mrf.mxu2  ;;  %1298 = vmatpush.msra.mxu1 %v1265_v25 }
 0x19d   : > { %v1143_v8 = vmax.f32 %v1115_v31, 0.0  ;;  %v909_v33 = vpop.f32.mrf.mxu3  ;;  %v820_v44 = vadd.f32 %v777_v47, %v674_v38 }
 0x19e   : > { %1299 = vmatpush.msra.mxu1 %v1264_v3 }
 0x19f   : > { %v1227_v49 = vmul.f32 %v1769_v30, %v1143_v8  ;;  %v952_v54 = vadd.f32 %v909_v33, %v820_v44 }
 0x1a0   : > { %v2435_v34 = vpop.f32.mrf.mxu0 }
 0x1a1   : > { %v2437_v41 = vmax.f32 %v1255_v42, %v1227_v49  ;;  %v685_v2 = vpop.f32.mrf.mxu1  ;;  %v1084_v18 = vadd.f32 %v1041_v58, %v952_v54 }
 0x1a2   : > { %v686_v36 = vadd.f32 %v685_v2, %v2241_v40 }
 0x1a3   : > { %v1116_v61 = vadd.f32 %v2315_v57, %v1084_v18 }
 0x1a4   : > { %v779_v46 = vpop.f32.mrf.mxu2 }
 0x1a5   : > { %v911_v6 = vpop.f32.mrf.mxu3  ;;  %v821_v47 = vadd.f32 %v779_v46, %v676_v55 }
 0x1a7   : > { %v953_v12 = vadd.f32 %v911_v6, %v821_v47 }
 0x1a8   : > { %v1046_v4 = vpop.f32.mrf.mxu0 }
 0x1a9   : > { %v688_v15 = vpop.f32.mrf.mxu1 }
 0x1aa   : > { %v689_v24 = vadd.f32 %v688_v15, %v2255_v45 }
 0x1ac   : > { %v782_v35 = vpop.f32.mrf.mxu2 }
 0x1ad   : > { %v914_v48 = vpop.f32.mrf.mxu3  ;;  %v822_v0 = vadd.f32 %v782_v35, %v679_v27 }
 0x1af   : > { %v954_v52 = vadd.f32 %v914_v48, %v822_v0 }
 0x1b0   : > { %v2439_v20 = vpop.f32.mrf.mxu0 }
 0x1b1   : > { %v690_v21 = vpop.f32.mrf.mxu1  ;;  %v1086_v35 = vadd.f32 %v1046_v4, %v954_v52  ;;  %v1144_v4 = vmax.f32 %v1116_v61, 0.0 }
 0x1b2   : > { %v691_v33 = vadd.f32 %v690_v21, %v2261_v50 }
 0x1b3   : > { %v1118_v58 = vadd.f32 %v2315_v57, %v1086_v35 }
 0x1b4   : > { %v784_v59 = vpop.f32.mrf.mxu2 }
 0x1b5   : > { %v916_v37 = vpop.f32.mrf.mxu3  ;;  %v823_v45 = vadd.f32 %v784_v59, %v681_v28  ;;  %v1770_v59 = vld [vmem:[#allocation7 + $0x9] ss:$0 sm:$0xff]  ;;  %v1146_v38 = vmax.f32 %v1118_v58, 0.0 }
 0x1b7   : > { %v955_v23 = vadd.f32 %v916_v37, %v823_v45 }
 0x1b8   : > { %v1051_v60 = vpop.f32.mrf.mxu0 }
 0x1b9   : > { %v693_v51 = vpop.f32.mrf.mxu1  ;;  %v1087_v3 = vadd.f32 %v2439_v20, %v955_v23 }
 0x1ba   : > { %v694_v46 = vadd.f32 %v693_v51, %v2273_v56  ;;  %v1772_v56 = vld [vmem:[#allocation7 + $0xb] ss:$0 sm:$0xff] }
 0x1bb   : > { %v1119_v54 = vadd.f32 %v2315_v57, %v1087_v3 }
 0x1bc   : > { %v787_v39 = vpop.f32.mrf.mxu2 }
 0x1bd   : > { %v919_v42 = vpop.f32.mrf.mxu3  ;;  %v824_v26 = vadd.f32 %v787_v39, %v684_v14 }
 0x1bf   : > { %v956_v31 = vadd.f32 %v919_v42, %v824_v26  ;;  %v1085_v42 = vadd.f32 %v2435_v34, %v953_v12 }
 0x1c0   : > { %v1053_v1 = vpop.f32.mrf.mxu0 }
 0x1c1   : > { %v1088_v25 = vadd.f32 %v1051_v60, %v956_v31  ;;  %v695_v14 = vpop.f32.mrf.mxu1 }
 0x1c2   : > { %v696_v55 = vadd.f32 %v695_v14, %v2277_v62 }
 0x1c3   : > { %v1120_v40 = vadd.f32 %v2315_v57, %v1088_v25 }
 0x1c4   : > { %v789_v7 = vpop.f32.mrf.mxu2 }
 0x1c5   : > { %v921_v43 = vpop.f32.mrf.mxu3  ;;  %v825_v39 = vadd.f32 %v789_v7, %v686_v36  ;;  %v1148_v27 = vmax.f32 %v1120_v40, 0.0 }
 0x1c7   : > { %v957_v2 = vadd.f32 %v921_v43, %v825_v39  ;;  %v1228_v43 = vmul.f32 %v1770_v59, %v1144_v4 }
 0x1c8   : > { %v1056_v10 = vpop.f32.mrf.mxu0 }
 0x1c9   : > { %v1089_v44 = vadd.f32 %v1053_v1, %v957_v2  ;;  %v1774_v1 = vld [vmem:[#allocation7 + $0xd] ss:$0 sm:$0xff]  ;;  %v1245_v31 = vmax.f32 %v1243_v9, %v1228_v43 }
 0x1cb   : > { %v1121_v20 = vadd.f32 %v2315_v57, %v1089_v44 }
 0x1cc   : > { %v792_v30 = vpop.f32.mrf.mxu2 }
 0x1cd   : > { %v924_v29 = vpop.f32.mrf.mxu3  ;;  %v826_v5 = vadd.f32 %v792_v30, %v689_v24  ;;  %v1117_v30 = vadd.f32 %v2315_v57, %v1085_v42  ;;  %v1149_v45 = vmax.f32 %v1121_v20, 0.0 }
 0x1cf   : > { %v958_v17 = vadd.f32 %v924_v29, %v826_v5  ;;  %v1773_v29 = vld [vmem:[#allocation7 + $0xc] ss:$0 sm:$0xff]  ;;  %v1232_v5 = vmul.f32 %v1772_v56, %v1148_v27  ;;  %v1145_v28 = vmax.f32 %v1117_v30, 0.0 }
 0x1d0   : > { %v1058_v8 = vpop.f32.mrf.mxu0 }
 0x1d1   : > { %v1090_v48 = vadd.f32 %v1056_v10, %v958_v17  ;;  %v1771_v10 = vld [vmem:[#allocation7 + $0xa] ss:$0 sm:$0xff]  ;;  %v1247_v35 = vmax.f32 %v1245_v31, %v1232_v5  ;;  %v1229_v25 = vmul.f32 %v1770_v59, %v1145_v28 }
 0x1d2   : > { %v1230_v26 = vmul.f32 %v1771_v10, %v1146_v38 }
 0x1d3   : > { %v1122_v60 = vadd.f32 %v2315_v57, %v1090_v48  ;;  %v1233_v48 = vmul.f32 %v1772_v56, %v1149_v45 }
 0x1d4   : > { %v794_v49 = vpop.f32.mrf.mxu2  ;;  %v1246_v17 = vmax.f32 %v2432_v22, %v1230_v26  ;;  %v1258_v22 = vmax.f32 %v1256_v13, %v1229_v25 }
 0x1d5   : > { %v926_v19 = vpop.f32.mrf.mxu3  ;;  %v827_v32 = vadd.f32 %v794_v49, %v691_v33  ;;  %v1150_v34 = vmax.f32 %v1122_v60, 0.0 }
 0x1d6   : > { %v1260_v4 = vmax.f32 %v1258_v22, %v1233_v48 }
 0x1d7   : > { %v959_v15 = vadd.f32 %v926_v19, %v827_v32  ;;  %v1234_v47 = vmul.f32 %v1773_v29, %v1150_v34  ;;  %v1147_v19 = vmax.f32 %v1119_v54, 0.0 }
 0x1d8   : > { %v1061_v37 = vpop.f32.mrf.mxu0 }
 0x1d9   : > { %v1091_v0 = vadd.f32 %v1058_v8, %v959_v15  ;;  %v1248_v61 = vmax.f32 %v1246_v17, %v1234_v47  ;;  %v1231_v12 = vmul.f32 %v1771_v10, %v1147_v19 }
 0x1db   : > { %v1123_v8 = vadd.f32 %v2315_v57, %v1091_v0  ;;  %v1259_v2 = vmax.f32 %v2437_v41, %v1231_v12 }
 0x1dc   : > { %v797_v50 = vpop.f32.mrf.mxu2 }
 0x1dd   : > { %v828_v7 = vadd.f32 %v797_v50, %v694_v46  ;;  %v929_v6 = vpop.f32.mrf.mxu3  ;;  %v1151_v53 = vmax.f32 %v1123_v8, 0.0 }
 0x1df   : > { %v960_v21 = vadd.f32 %v929_v6, %v828_v7  ;;  %v1235_v23 = vmul.f32 %v1773_v29, %v1151_v53 }
 0x1e0   : > { %v1063_v39 = vpop.f32.mrf.mxu0 }
 0x1e1   : > { %v1092_v24 = vadd.f32 %v1061_v37, %v960_v21  ;;  %v1261_v59 = vmax.f32 %v1259_v2, %v1235_v23 }
 0x1e3   : > { %v1124_v52 = vadd.f32 %v2315_v57, %v1092_v24 }
 0x1e4   : > { %v799_v18 = vpop.f32.mrf.mxu2 }
 0x1e5   : > { %v1152_v49 = vmax.f32 %v1124_v52, 0.0  ;;  %v829_v36 = vadd.f32 %v799_v18, %v696_v55  ;;  %v931_v62 = vpop.f32.mrf.mxu3 }
 0x1e7   : > { %v1236_v51 = vmul.f32 %v1774_v1, %v1152_v49  ;;  %v961_v33 = vadd.f32 %v931_v62, %v829_v36 }
 0x1e9   : > { %v1249_v16 = vmax.f32 %v1247_v35, %v1236_v51  ;;  %v1093_v9 = vadd.f32 %v1063_v39, %v961_v33 }
 0x1eb   : > { %v1250_v32 = vmax.f32 %v1248_v61, %v1249_v16  ;;  %v1125_v58 = vadd.f32 %v2315_v57, %v1093_v9  ;;  %v1775_v57 = vld [vmem:[%s2515_s5] ss:$0 sm:$0xff] }
 0x1ed   : > { %v1153_v46 = vmax.f32 %v1125_v58, 0.0  ;;  %1300 = vmatmul.f32.vlgmr.msra.gmra.mxu1 %v1250_v32 }
 0x1ef   : > { %v1237_v40 = vmul.f32 %v1774_v1, %v1153_v46 }
 0x1f1   : > { %v1262_v42 = vmax.f32 %v1260_v4, %v1237_v40 }
 0x1f3   : > { %v1263_v50 = vmax.f32 %v1261_v59, %v1262_v42 }
 0x1f5   : > { %1303 = vmatmul.f32.gmra.mxu1 %v1263_v50 }
 0x26a   : > { %v1301_v11 = vpop.f32.mrf.mxu1 }
 0x26b   : > { %v1302_v63 = vadd.f32 %v1775_v57, %v1301_v11 }
 0x26d   : > { %1307 = vst [vmem:[%s346_s13] sm:$0xff] %v1302_v63 }
 0x272   : > { %v1304_v13 = vpop.f32.mrf.mxu1 }
 0x273   : > { %v1305_v41 = vadd.f32 %v1775_v57, %v1304_v13 }
 0x275   : > { %1308 = vst [vmem:[%s346_s13 + $0x8] sm:$0xff] %v1305_v41 }
 0x276   : > { %1893 = shalt.err (!%p1890_p9)
}
 0x277   : > { %s1957_s20 = smov 128   ;;  %s1958_s7 = smov 8  }
 0x278   : > { %1688 = dma.vmem_to_hbm [thread:$0]  (%p2046_p11), %s1323_s15, 256, %s1325_s18, %s1310_s19, %s1957_s20, %s1957_s20, %s1958_s7  }
 0x279 PF: > { %s1339_s11 = sand.u32 1, %s1928_s21   ;;  %p1701_p10 = pnand %p1432_p2, %p2050_p12 }
 0x27a   : > { %s1340_s14 = scalar_lea.sflag [#allocation4], %s1339_s11 }
 0x27b   : > { %p1702_p13 = pneg %p1701_p10 }
 0x27d   : > { %1923 = dma.done.wait (%p1702_p13), %s1340_s14, 256  }
 0x27e   : > { %1925 = vsyncadd (%p1702_p13), %s1340_s14, 4294967040  ;;  %s2534_s24 = sld [smem:[#allocation18_spill]]  ;;  %s2536_s21 = smov %s1932_s22 }
 0x27f   : > { %s2535_s1 = sld [smem:[#allocation19_spill]]  ;;  %s2537_s22 = smov %s1936_s23 }
 0x284   : > { %p21_p1 = scmp.ge.s32.totalorder %s2534_s24, 4  }
 0x285   : > { %s2538_s23 = smov %s2535_s1 }
 0x286   :  { %23 = sbr.rel (!%p21_p1) target bundleno = 10 (0xa), region = 110 }
 0x28b   :  { %1346 = vsyncpa [#allocation3], 1 }
 0x28c   :  { %1348 = vsyncpa [#allocation3 + $0x1], 1 }
 0x28d   :  { %1349 = vsyncpa [#allocation6], 1 }
 0x28e   :  { %1350 = vsyncpa [#allocation9], 1 }
 0x28f   :  { %1351 = vsyncpa [#allocation4], 1 }
 0x290   :  { %1353 = vsyncpa [#allocation4 + $0x1], 1 }

// kernel: tpu_custom_call.1
= control target key start
LH: loop header
LB: loop body
LE: loop exit
PB: predicated region body
PF: predicated region fallthrough
CT: control target
= control target key end

     0   :  { %s2510_s0 = inlined_call_operand.hbm [shape: bf16[18,32,32], index: 0, kind: input, shape index: {}]   ;;  %s2511_s1 = inlined_call_operand.hbm [shape: bf16[5,32,128], index: 1, kind: input, shape index: {}]   ;;  %s2512_s2 = inlined_call_operand.vmem [shape: f32[1,128], index: 2, kind: input, shape index: {}]   ;;  %s2513_s3 = inlined_call_operand.hbm [shape: f32[14,1,128], index: 3, kind: input, shape index: {}]   ;;  %s2514_s4 = inlined_call_operand.hbm [shape: f32[128,128], index: 4, kind: input, shape index: {}]   ;;  %s2515_s5 = inlined_call_operand.vmem [shape: f32[1,128], index: 5, kind: input, shape index: {}]   ;;  %s2516_s6 = inlined_call_operand.hbm [shape: f32[32,128], index: 6, kind: output, shape index: {}]  }
   0x1   :  { %2520 = sst [smem:[#allocation21_spill]] %s2511_s1 }
   0x2   :  { %2521 = sst [smem:[#allocation22_spill]] %s2513_s3 }
   0x3   :  { %11 = vsyncpa [#allocation3], 0 }
   0x4   :  { %13 = vsyncpa [#allocation3 + $0x1], 0 }
   0x5   :  { %14 = vsyncpa [#allocation6], 0 }
   0x6   :  { %15 = vsyncpa [#allocation9], 0 }
   0x7   :  { %16 = vsyncpa [#allocation4], 0 }
   0x8   :  { %18 = vsyncpa [#allocation4 + $0x1], 0  ;;  %s1994_s21 = smov 0   ;;  %s1996_s22 = smov 0  }
   0x9   :  { %s1998_s23 = smov 0   ;;  %s2000_s24 = smov 0  }
   0xa LB: > { %s2015_s25 = sadd.s32 4294967295, %s1940_s24   ;;  %s1427_s26 = sadd.s32 4294967294, %s1940_s24   ;;  %s1940_s24 = sphi %s2000_s24, %s2534_s24   ;;  %s1936_s23 = sphi %s1998_s23, %s2538_s23   ;;  %s1932_s22 = sphi %s1996_s22, %s2537_s22   ;;  %s1928_s21 = sphi %s1994_s21, %s2536_s21  }
   0xb   : > { %s2019_s27 = sadd.s32 1, %s1940_s24   ;;  %s31_s28 = sadd.s32 1, %s1936_s23 }
   0xc   : > { %2522 = sst [smem:[#allocation18_spill]] %s2019_s27  ;;  %s28_s29 = ssub.s32 %s1940_s24, %s2019_s27 }
   0xd   : > { %p38_p0 = scmp.ne.s32.totalorder %s1936_s23, %s1932_s22  ;;  %p29_p1 = scmp.eq.s32.totalorder %s28_s29, 0 }
   0xe   : > { %p39_p2 = scmp.eq.s32.totalorder %s1940_s24, 0  ;;  %p44_p3 = scmp.ne.s32.totalorder %s1932_s22, %s1928_s21 }
   0xf   : > { %p45_p4 = scmp.eq.s32.totalorder %s2015_s25, 0  ;;  %p173_p7 = scmp.eq.s32.totalorder %s2015_s25, 1 }
  0x10   : > { %s2031_s30 = scalar_select %p29_p1, %s1936_s23, %s31_s28  }
  0x11   : > { %p2033_p5 = por %p39_p2, %p38_p0  ;;  %p2039_p6 = por %p45_p4, %p44_p3 }
  0x12   : > { %2523 = sst [smem:[#allocation19_spill]] %s2031_s30  ;;  %p179_p8 = scmp.eq.s32.totalorder %s1427_s26, 1 }
  0x13   : > { %p1428_p9 = scmp.ge.s32.totalorder %s1940_s24, 1  ;;  %p186_p10 = scmp.lt.s32.totalorder %s1940_s24, 3 }
  0x14   : > { %p2046_p11 = por %p173_p7, %p38_p0  ;;  %p2050_p12 = por %p179_p8, %p44_p3 }
  0x15   : > { %p2054_p13 = pnand %p1428_p9, %p186_p10  ;;  %s2530_s1 = sld [smem:[#allocation21_spill]] }
  0x16   : > { %s2527_s10 = scalar_select %p2050_p12, 1, 0 }
  0x17   : > { %p1690_p1 = pneg %p2054_p13  ;;  %s1942_s15 = smov [#allocation5]  }
  0x18   : > { %2528 = sst [smem:[#allocation20_spill]] %s2527_s10  ;;  %s199_s16 = sshll.u32 %s1942_s15, 4  ;;  %s200_s16 = int_to_ptr.vmem [resolvable:$true] %s199_s16 }
  0x19   : > { %p2065_p0 = pnand %p1690_p1, %p45_p4  ;;  %s2532_s3 = sld [smem:[#allocation22_spill]] }
  0x1a   : > { %s1943_s26 = smov 64   ;;  %s1944_s28 = smov 4  }
  0x1b   : > { %s197_s14 = sshll.u32 %s2530_s1, 4  ;;  %s1945_s29 = smov [#allocation7]   ;;  %s198_s14 = int_to_ptr.hbm [resolvable:$true] %s197_s14 }
  0x1c   : > { %1693 = dma.hbm_to_vmem [thread:$0]  (!%p2065_p0), %s198_s14, 1280, %s200_s16, [#allocation6], %s1943_s26, %s1943_s26, %s1944_s28  }
  0x1d   : > { %s216_s12 = sshll.u32 %s1945_s29, 4  ;;  %s228_s1 = sshll.u32 %s2514_s4, 4  ;;  %s217_s12 = int_to_ptr.vmem [resolvable:$true] %s216_s12  ;;  %s229_s1 = int_to_ptr.hbm [resolvable:$true] %s228_s1 }
  0x1e   : > { %s1946_s30 = smov 16   ;;  %s1947_s27 = smov 1  }
  0x1f   : > { %s214_s20 = sshll.u32 %s2532_s3, 4  ;;  %s1948_s18 = smov [#allocation8]   ;;  %s215_s20 = int_to_ptr.hbm [resolvable:$true] %s214_s20 }
  0x20   : > { %1696 = dma.hbm_to_vmem [thread:$0]  (!%p2065_p0), %s215_s20, 224, %s217_s12, [#allocation6], %s1946_s30, %s1946_s30, %s1947_s27  }
  0x21   : > { %s230_s19 = sshll.u32 %s1948_s18, 4  ;;  %s1949_s3 = smov 128   ;;  %s231_s19 = int_to_ptr.vmem [resolvable:$true] %s230_s19 }
  0x22   : > { %s1950_s10 = smov 8   ;;  %p1432_p2 = scmp.ge.s32.totalorder %s1940_s24, 2 }
  0x23   : > { %1699 = dma.hbm_to_vmem [thread:$0]  (!%p2065_p0), %s229_s1, 2048, %s231_s19, [#allocation9], %s1949_s3, %s1949_s3, %s1950_s10  }
  0x24   : > { %243 = sbr.rel (%p1432_p2) target bundleno = 55 (0x37), region = 36 }
  0x29   : > { %s247_s14 = sand.u32 1, %s1936_s23   ;;  %s1629_s27 = sshll.u32 %s1940_s24, 3 }
  0x2a   : > { %s1665_s30 = smul.u32 144, %s247_s14  ;;  %s256_s17 = scalar_lea.hbm %s2510_s0, %s1629_s27 }
  0x2b   : > { %s269_s1 = sshll.u32 %s256_s17, 4  ;;  %s1951_s29 = smov 256   ;;  %s270_s1 = int_to_ptr.hbm [resolvable:$true] %s269_s1 }
  0x2c   : > { %s1673_s3 = scalar_select %p2033_p5, [#allocation0], [#allocation13] }
  0x2d   : > { %s251_s10 = scalar_lea.vmem [#allocation2], %s1665_s30  ;;  %1674 = sst [smem:[#allocation12]] (%p2033_p5), %s1951_s29 }
  0x2e   : > { %s271_s26 = sshll.u32 %s251_s10, 4  ;;  %s261_s28 = sld [smem:[%s1673_s3]]   ;;  %s272_s26 = int_to_ptr.vmem [resolvable:$true] %s271_s26 }
  0x2f   : > { %s1952_s12 = smov 128   ;;  %s1953_s13 = smov 2  }
  0x30   : > { %1675 = sst [smem:[#allocation12 + $0x1]] (%p2033_p5), %s1952_s12  ;;  %s1954_s15 = smov 64  }
  0x31   : > { %1676 = sst [smem:[#allocation12 + $0x2]] (%p2033_p5), %s1953_s13  ;;  %s1955_s19 = smov 4  }
  0x32   : > { %1677 = sst [smem:[#allocation12 + $0x3]] (%p2033_p5), %s1954_s15  ;;  %s248_s30 = scalar_lea.sflag [#allocation3], %s247_s14 }
  0x33   : > { %1678 = sst [smem:[#allocation12 + $0x4]] (%p2033_p5), %s1954_s15  ;;  %s1956_s16 = smov [#allocation11]  }
  0x34   : > { %s1435_s18 = sshll.u32 %s261_s28, 26  ;;  %1679 = sst [smem:[#allocation12 + $0x5]] (%p2033_p5), %s1955_s19 }
  0x35   : > { %s1436_s27 = sadd.s32 134217728, %s1435_s18 }
  0x36   : > { %1680 = dma.general (%p2033_p5), %s270_s1, 2304, %s272_s26, %s248_s30, %s1956_s16, [#allocation12], %s1436_s27, 0  }
  0x37 PF: > { %296 = sbr.rel (%p2054_p13) target bundleno = 633 (0x279), region = 44  ;;  %s2108_s20 = sand.u32 (!%p2054_p13), 1, %s1932_s22  }
  0x38   : > { %s1666_s17 = smul.u32 (!%p2054_p13), 144, %s2108_s20  ;;  %s299_s3 = scalar_lea.sflag (!%p2054_p13), [#allocation3], %s2108_s20 }
  0x3a   : > { %s2112_s10 = scalar_lea.vmem (!%p2054_p13), [#allocation2], %s1666_s17 }
  0x3c   : > { %1911 = dma.done.wait (%p2039_p6), %s299_s3, 2304  }
  0x3d   : > { %1913 = vsyncadd (%p2039_p6), %s299_s3, 4294964992 }
  0x3e   : > { %1915 = dma.done.wait (%p45_p4), [#allocation6], 1504  }
  0x3f   : > { %1917 = vsyncadd (%p45_p4), [#allocation6], 4294965792 }
  0x40   : > { %1919 = dma.done.wait (%p45_p4), [#allocation9], 2048  }
  0x41   : > { %1921 = vsyncadd (%p45_p4), [#allocation9], 4294965248  ;;  %v1651_v0 = vld [vmem:[#allocation5 + $0x18] sm:$0xff]  ;;  %v1650_v1 = vld [vmem:[#allocation5 + $0x10] sm:$0xff]  ;;  %vm477_vm0 = vcmask 261120   ;;  %s1441_s11 = sshll.u32 %s2108_s20, 4 }
  0x42   : > { %1659 = vmatpush.bf16.msra.mxu1 %v1651_v0  ;;  %1660 = vmatpush.bf16.msra.mxu2 %v1651_v0  ;;  %v2127_v2 = vld [vmem:[%s2112_s10 + $0x28] sm:$0xff]  ;;  %v2130_v3 = vld [vmem:[%s2112_s10 + $0x38] sm:$0xff]  ;;  %v1652_v10 = vld [vmem:[#allocation5 + $0x20] sm:$0xff]  ;;  %s1658_s26 = sshll.u32 %s2015_s25, 4  ;;  %s346_s13 = scalar_lea.vmem [#allocation10], %s1441_s11 }
  0x43   : > { %1661 = vmatpush.bf16.msra.mxu3 %v1651_v0  ;;  %526 = vmatpush.bf16.msra.mxu0 %v1651_v0  ;;  %v2133_v4 = vld [vmem:[%s2112_s10 + $0x58] sm:$0xff]  ;;  %v1631_v6 = vld [vmem:[%s2112_s10 + $0x8] sm:$0xff]  ;;  %v1654_v11 = vld [vmem:[#allocation5 + $0x30] sm:$0xff]  ;;  %s1321_s12 = scalar_lea.hbm %s2516_s6, %s1658_s26  ;;  %s1322_s15 = sshll.u32 %s346_s13, 4  ;;  %s1323_s15 = int_to_ptr.vmem [resolvable:$true] %s1322_s15 }
  0x44   : > { %v1653_v5 = vld [vmem:[#allocation5 + $0x28] sm:$0xff]  ;;  %v1655_v7 = vld [vmem:[#allocation5 + $0x38] sm:$0xff]  ;;  %v1648_v12 = vld [vmem:[#allocation5] sm:$0xff]  ;;  %s1324_s18 = sshll.u32 %s1321_s12, 4  ;;  %s1310_s19 = scalar_lea.sflag [#allocation4], %s2108_s20  ;;  %s1325_s18 = int_to_ptr.hbm [resolvable:$true] %s1324_s18 }
  0x45   : > { %v1657_v8 = vld [vmem:[#allocation5 + $0x48] sm:$0xff]  ;;  %v1656_v13 = vld [vmem:[#allocation5 + $0x40] sm:$0xff]  ;;  %v1279_v54 = vld [vmem:[#allocation8 + $0x78] sm:$0xff]  ;;  %s1880_s27 = sshra.s32 %s1325_s18, 4  ;;  %s1886_s17 = scalar_lea.hbm %s2516_s6, 32  ;;  %s1881_s27 = int_to_ptr.hbm [resolvable:$true] %s1880_s27 }
  0x46   : > { %v1649_v9 = vld [vmem:[#allocation5 + $0x8] sm:$0xff]  ;;  %1662 = vmatpush.bf16.msra.mxu1 %v1650_v1  ;;  %1663 = vmatpush.bf16.msra.mxu2 %v1650_v1  ;;  %v1636_v14 = vld [vmem:[%s2112_s10 + $0x30] sm:$0xff]  ;;  %v2145_v15 = vld [vmem:[%s2112_s10 + $0x40] sm:$0xff]  ;;  %s1882_s25 = scalar_lea.hbm %s1881_s27, 16  ;;  %p1887_p6 = scmp.lt.s32.totalorder %s1881_s27, %s2516_s6 }
  0x47   : > { %1664 = vmatpush.bf16.msra.mxu3 %v1650_v1  ;;  %527 = vmatpush.bf16.msra.mxu0 %v1650_v1  ;;  %v2148_v16 = vld [vmem:[%s2112_s10 + $0x60] sm:$0xff]  ;;  %v1632_v17 = vld [vmem:[%s2112_s10 + $0x10] sm:$0xff]  ;;  %v2158_v18 = vld [vmem:[%s2112_s10 + $0x48] sm:$0xff]  ;;  %p1883_p3 = scmp.ne.s32.totalorder %s1881_s27, %s1882_s25  ;;  %p1888_p7 = scmp.lt.s32.totalorder %s1886_s17, %s1882_s25 }
  0x48   : > { %v1630_v19 = vld [vmem:[%s2112_s10] sm:$0xff]  ;;  %v2162_v20 = vld [vmem:[%s2112_s10 + $0x68] sm:$0xff]  ;;  %v1633_v21 = vld [vmem:[%s2112_s10 + $0x18] sm:$0xff] }
  0x49   : > { %1510 = vmatmul.msk.bf16.vlgmr.msra.gmra.mxu1 %vm477_vm0, %v2127_v2  ;;  %1512 = vmatmul.msk.bf16.vlgmr.msra.gmra.mxu2 %vm477_vm0, %v2130_v3  ;;  %v2172_v22 = vld [vmem:[%s2112_s10 + $0x50] sm:$0xff]  ;;  %v1634_v24 = vld [vmem:[%s2112_s10 + $0x20] sm:$0xff]  ;;  %p1884_p4 = pnand %p1883_p3, %p2046_p11  ;;  %p1889_p8 = por %p1888_p7, %p1887_p6 }
  0x4a   : > { %729 = vmatpush.bf16.msrb.mxu2 %v1653_v5  ;;  %1516 = vmatmul.msk.bf16.vlgmr.msra.gmra.mxu3 %vm477_vm0, %v2133_v4  ;;  %v2175_v23 = vld [vmem:[%s2112_s10 + $0x70] sm:$0xff] }
  0x4b   : > { %861 = vmatpush.bf16.msrb.mxu3 %v1655_v7  ;;  %1506 = vmatmul.msk.bf16.vlgmr.msra.gmra.mxu0 %vm477_vm0, %v1631_v6  ;;  %v1278_v60 = vld [vmem:[#allocation8 + $0x70] sm:$0xff]  ;;  %p1885_p5 = pneg %p1884_p4 }
  0x4c   : > { %993 = vmatpush.bf16.msrb.mxu0 %v1657_v8  ;;  %625 = vmatpush.bf16.msrb.mxu1 %v1649_v9  ;;  %v1277_v8 = vld [vmem:[#allocation8 + $0x68] sm:$0xff] }
  0x4d   : > { %p1890_p9 = pnand %p1889_p8, %p1885_p5 }
  0x4e   : > { %730 = vmatpush.bf16.msrb.mxu2 %v1652_v10 }
  0x4f   : > { %862 = vmatpush.bf16.msrb.mxu3 %v1654_v11 }
  0x50   : > { %626 = vmatpush.bf16.msrb.mxu1 %v1648_v12  ;;  %994 = vmatpush.bf16.msrb.mxu0 %v1656_v13 }
  0x54   : > { %1284 = vmatpush.msra.mxu1 %v1279_v54 }
  0x56   : > { %1285 = vmatpush.msra.mxu1 %v1278_v60 }
  0x58   : > { %1286 = vmatpush.msra.mxu1 %v1277_v8 }
  0x59   : > { %1511 = vmatmul.msk.bf16.gmra.mxu1 %vm477_vm0, %v1636_v14  ;;  %1513 = vmatmul.msk.bf16.gmra.mxu2 %vm477_vm0, %v2145_v15 }
  0x5a   : > { %1517 = vmatmul.msk.bf16.gmra.mxu3 %vm477_vm0, %v2148_v16 }
  0x5b   : > { %1507 = vmatmul.msk.bf16.gmra.mxu0 %vm477_vm0, %v1632_v17 }
  0x69   : > { %1514 = vmatmul.msk.bf16.gmra.mxu2 %vm477_vm0, %v2158_v18  ;;  %1532 = vmatmul.msk.bf16.vlgmr.msrb.gmra.mxu1 %vm477_vm0, %v1630_v19 }
  0x6a   : > { %1518 = vmatmul.msk.bf16.gmra.mxu3 %vm477_vm0, %v2162_v20 }
  0x6b   : > { %1508 = vmatmul.msk.bf16.gmra.mxu0 %vm477_vm0, %v1633_v21 }
  0x79   : > { %1515 = vmatmul.msk.bf16.gmra.mxu2 %vm477_vm0, %v2172_v22  ;;  %1533 = vmatmul.msk.bf16.gmra.mxu1 %vm477_vm0, %v1631_v6 }
  0x7a   : > { %1519 = vmatmul.msk.bf16.gmra.mxu3 %vm477_vm0, %v2175_v23 }
  0x7b   : > { %1509 = vmatmul.msk.bf16.gmra.mxu0 %vm477_vm0, %v1634_v24 }
  0x89   : > { %1534 = vmatmul.msk.bf16.gmra.mxu1 %vm477_vm0, %v1632_v17  ;;  %1558 = vmatmul.msk.bf16.vlgmr.msrb.gmra.mxu2 %vm477_vm0, %v1632_v17 }
  0x8a   : > { %1584 = vmatmul.msk.bf16.vlgmr.msrb.gmra.mxu3 %vm477_vm0, %v1633_v21 }
  0x8b   : > { %1610 = vmatmul.msk.bf16.vlgmr.msrb.gmra.mxu0 %vm477_vm0, %v1634_v24 }
  0x99   : > { %1535 = vmatmul.msk.bf16.gmra.mxu1 %vm477_vm0, %v1633_v21  ;;  %1559 = vmatmul.msk.bf16.gmra.mxu2 %vm477_vm0, %v1633_v21 }
  0x9a   : > { %1585 = vmatmul.msk.bf16.gmra.mxu3 %vm477_vm0, %v1634_v24 }
  0x9b   : > { %1611 = vmatmul.msk.bf16.gmra.mxu0 %vm477_vm0, %v2127_v2 }
  0xa9   : > { %1536 = vmatmul.msk.bf16.gmra.mxu1 %vm477_vm0, %v1634_v24  ;;  %1560 = vmatmul.msk.bf16.gmra.mxu2 %vm477_vm0, %v1634_v24 }
  0xaa   : > { %1586 = vmatmul.msk.bf16.gmra.mxu3 %vm477_vm0, %v2127_v2 }
  0xab   : > { %1612 = vmatmul.msk.bf16.gmra.mxu0 %vm477_vm0, %v1636_v14 }
  0xb9   : > { %1537 = vmatmul.msk.bf16.gmra.mxu1 %vm477_vm0, %v2127_v2  ;;  %1561 = vmatmul.msk.bf16.gmra.mxu2 %vm477_vm0, %v2127_v2 }
  0xba   : > { %1587 = vmatmul.msk.bf16.gmra.mxu3 %vm477_vm0, %v1636_v14 }
  0xbb   : > { %1613 = vmatmul.msk.bf16.gmra.mxu0 %vm477_vm0, %v2130_v3 }
  0xc6   : > { %v2205_v25 = vpop.f32.mrf.mxu1 }
  0xc8   : > { %v529_v26 = vpop.f32.mrf.mxu0 }
  0xc9   : > { %1538 = vmatmul.msk.bf16.gmra.mxu1 %vm477_vm0, %v1636_v14  ;;  %1562 = vmatmul.msk.bf16.gmra.mxu2 %vm477_vm0, %v1636_v14 }
  0xca   : > { %1588 = vmatmul.msk.bf16.gmra.mxu3 %vm477_vm0, %v2130_v3 }
  0xcb   : > { %1614 = vmatmul.msk.bf16.gmra.mxu0 %vm477_vm0, %v2145_v15 }
  0xcc   : > { %v2213_v27 = vpop.f32.mrf.mxu2 }
  0xcd   : > { %v2215_v28 = vpop.f32.mrf.mxu3 }
  0xce   : > { %v2217_v29 = vpop.f32.mrf.mxu1 }
  0xd0   : > { %v531_v30 = vpop.f32.mrf.mxu0 }
  0xd4   : > { %v2219_v31 = vpop.f32.mrf.mxu2 }
  0xd5   : > { %v2221_v32 = vpop.f32.mrf.mxu3 }
  0xd6   : > { %v2223_v33 = vpop.f32.mrf.mxu1 }
  0xd8   : > { %v534_v34 = vpop.f32.mrf.mxu0 }
  0xd9   : > { %1539 = vmatmul.msk.bf16.gmra.mxu1 %vm477_vm0, %v2130_v3  ;;  %1563 = vmatmul.msk.bf16.gmra.mxu2 %vm477_vm0, %v2130_v3 }
  0xda   : > { %1589 = vmatmul.msk.bf16.gmra.mxu3 %vm477_vm0, %v2145_v15 }
  0xdb   : > { %1615 = vmatmul.msk.bf16.gmra.mxu0 %vm477_vm0, %v2158_v18 }
  0xdc   : > { %v2233_v35 = vpop.f32.mrf.mxu2 }
  0xdd   : > { %v2235_v36 = vpop.f32.mrf.mxu3 }
  0xde   : > { %v2237_v37 = vpop.f32.mrf.mxu1 }
  0xe0   : > { %v536_v38 = vpop.f32.mrf.mxu0 }
  0xe4   : > { %v2239_v39 = vpop.f32.mrf.mxu2 }
  0xe5   : > { %v2241_v40 = vpop.f32.mrf.mxu3 }
  0xe6   : > { %v628_v41 = vpop.f32.mrf.mxu1 }
  0xe7   : > { %v629_v42 = vadd.f32 %v628_v41, %v529_v26  ;;  %v1276_v41 = vld [vmem:[#allocation8 + $0x60] sm:$0xff] }
  0xe8   : > { %v2243_v43 = vpop.f32.mrf.mxu0  ;;  %1287 = vmatpush.msra.mxu1 %v1276_v41 }
  0xe9   : > { %1540 = vmatmul.msk.bf16.gmra.mxu1 %vm477_vm0, %v2145_v15  ;;  %1564 = vmatmul.msk.bf16.gmra.mxu2 %vm477_vm0, %v2145_v15 }
  0xea   : > { %1590 = vmatmul.msk.bf16.gmra.mxu3 %vm477_vm0, %v2158_v18 }
  0xeb   : > { %1616 = vmatmul.msk.bf16.gmra.mxu0 %vm477_vm0, %v2172_v22 }
  0xec   : > { %v2253_v44 = vpop.f32.mrf.mxu2 }
  0xed   : > { %v2255_v45 = vpop.f32.mrf.mxu3 }
  0xee   : > { %v630_v46 = vpop.f32.mrf.mxu1 }
  0xef   : > { %v631_v47 = vadd.f32 %v630_v46, %v531_v30 }
  0xf0   : > { %v2257_v48 = vpop.f32.mrf.mxu0 }
  0xf4   : > { %v2259_v49 = vpop.f32.mrf.mxu2 }
  0xf5   : > { %v2261_v50 = vpop.f32.mrf.mxu3 }
  0xf6   : > { %v633_v51 = vpop.f32.mrf.mxu1 }
  0xf7   : > { %v634_v52 = vadd.f32 %v633_v51, %v534_v34 }
  0xf8   : > { %v544_v53 = vpop.f32.mrf.mxu0 }
  0xf9   : > { %1541 = vmatmul.msk.bf16.gmra.mxu1 %vm477_vm0, %v2158_v18  ;;  %1565 = vmatmul.msk.bf16.gmra.mxu2 %vm477_vm0, %v2158_v18 }
  0xfa   : > { %1591 = vmatmul.msk.bf16.gmra.mxu3 %vm477_vm0, %v2172_v22 }
  0xfb   : > { %1617 = vmatmul.msk.bf16.gmra.mxu0 %vm477_vm0, %v2133_v4 }
  0xfc   : > { %v2271_v55 = vpop.f32.mrf.mxu2 }
  0xfd   : > { %v2273_v56 = vpop.f32.mrf.mxu3 }
  0xfe   : > { %v635_v57 = vpop.f32.mrf.mxu1 }
  0xff   : > { %v636_v58 = vadd.f32 %v635_v57, %v536_v38  ;;  %v2315_v57 = vld [vmem:[%s2512_s2] ss:$0 sm:$0xff] }
 0x100   : > { %v546_v59 = vpop.f32.mrf.mxu0 }
 0x104   : > { %v2275_v61 = vpop.f32.mrf.mxu2 }
 0x105   : > { %v2277_v62 = vpop.f32.mrf.mxu3 }
 0x106   : > { %v638_v63 = vpop.f32.mrf.mxu1 }
 0x108   : > { %v996_v0 = vpop.f32.mrf.mxu0 }
 0x109   : > { %1542 = vmatmul.msk.bf16.gmra.mxu1 %vm477_vm0, %v2172_v22  ;;  %1566 = vmatmul.msk.bf16.gmra.mxu2 %vm477_vm0, %v2172_v22 }
 0x10a   : > { %1592 = vmatmul.msk.bf16.gmra.mxu3 %vm477_vm0, %v2133_v4 }
 0x10b   : > { %1618 = vmatmul.msk.bf16.gmra.mxu0 %vm477_vm0, %v2148_v16 }
 0x10c   : > { %v732_v1 = vpop.f32.mrf.mxu2 }
 0x10d   : > { %v802_v2 = vadd.f32 %v732_v1, %v629_v42  ;;  %v864_v3 = vpop.f32.mrf.mxu3 }
 0x10e   : > { %v640_v5 = vpop.f32.mrf.mxu1 }
 0x10f   : > { %v934_v6 = vadd.f32 %v864_v3, %v802_v2 }
 0x110   : > { %v998_v7 = vpop.f32.mrf.mxu0 }
 0x111   : > { %v1066_v9 = vadd.f32 %v996_v0, %v934_v6  ;;  %v1275_v6 = vld [vmem:[#allocation8 + $0x58] sm:$0xff] }
 0x112   : > { %1288 = vmatpush.msra.mxu1 %v1275_v6  ;;  %v1764_v6 = vld [vmem:[#allocation7 + $0x3] ss:$0 sm:$0xff] }
 0x114   : > { %v734_v10 = vpop.f32.mrf.mxu2 }
 0x115   : > { %v803_v11 = vadd.f32 %v734_v10, %v631_v47  ;;  %v866_v12 = vpop.f32.mrf.mxu3  ;;  %v1763_v10 = vld [vmem:[#allocation7 + $0x2] ss:$0 sm:$0xff] }
 0x116   : > { %v643_v13 = vpop.f32.mrf.mxu1 }
 0x117   : > { %v935_v14 = vadd.f32 %v866_v12, %v803_v11  ;;  %v2287_v15 = vadd.f32 %v643_v13, %v544_v53 }
 0x118   : > { %v1001_v17 = vpop.f32.mrf.mxu0 }
 0x119   : > { %v1067_v18 = vadd.f32 %v998_v7, %v935_v14  ;;  %1543 = vmatmul.msk.bf16.gmra.mxu1 %vm477_vm0, %v2133_v4  ;;  %1567 = vmatmul.msk.bf16.gmra.mxu2 %vm477_vm0, %v2133_v4 }
 0x11a   : > { %1593 = vmatmul.msk.bf16.gmra.mxu3 %vm477_vm0, %v2148_v16 }
 0x11b   : > { %1619 = vmatmul.msk.bf16.gmra.mxu0 %vm477_vm0, %v2162_v20 }
 0x11c   : > { %v737_v19 = vpop.f32.mrf.mxu2 }
 0x11d   : > { %v804_v21 = vadd.f32 %v737_v19, %v634_v52  ;;  %v869_v22 = vpop.f32.mrf.mxu3  ;;  %v639_v52 = vadd.f32 %v638_v63, %v2243_v43  ;;  %v1761_v43 = vld [vmem:[#allocation7] ss:$0 sm:$0xff]  ;;  %v641_v63 = vadd.f32 %v640_v5, %v2257_v48 }
 0x11e   : > { %v645_v24 = vpop.f32.mrf.mxu1 }
 0x11f   : > { %v936_v26 = vadd.f32 %v869_v22, %v804_v21  ;;  %v2297_v30 = vadd.f32 %v645_v24, %v546_v59  ;;  %v1099_v21 = vadd.f32 %v2315_v57, %v1067_v18 }
 0x120   : > { %v1003_v34 = vpop.f32.mrf.mxu0 }
 0x121   : > { %v1068_v38 = vadd.f32 %v1001_v17, %v936_v26  ;;  %v1127_v18 = vmax.f32 %v1099_v21, 0.0 }
 0x124   : > { %v739_v42 = vpop.f32.mrf.mxu2 }
 0x125   : > { %v805_v46 = vadd.f32 %v739_v42, %v636_v58  ;;  %v871_v4 = vpop.f32.mrf.mxu3 }
 0x126   : > { %v2299_v47 = vpop.f32.mrf.mxu1 }
 0x127   : > { %v937_v51 = vadd.f32 %v871_v4, %v805_v46 }
 0x128   : > { %v1006_v53 = vpop.f32.mrf.mxu0 }
 0x129   : > { %v2301_v54 = vadd.f32 %v1003_v34, %v937_v51  ;;  %1544 = vmatmul.msk.bf16.gmra.mxu1 %vm477_vm0, %v2148_v16  ;;  %1568 = vmatmul.msk.bf16.gmra.mxu2 %vm477_vm0, %v2148_v16  ;;  %v1098_v16 = vadd.f32 %v2315_v57, %v1066_v9  ;;  %v2325_v9 = vld [vmem:[%s2112_s10 + $0x78] sm:$0xff] }
 0x12a   : > { %1594 = vmatmul.msk.bf16.gmra.mxu3 %vm477_vm0, %v2162_v20  ;;  %v1274_v34 = vld [vmem:[#allocation8 + $0x50] sm:$0xff] }
 0x12b   : > { %1620 = vmatmul.msk.bf16.gmra.mxu0 %vm477_vm0, %v2175_v23  ;;  %v1126_v7 = vmax.f32 %v1098_v16, 0.0  ;;  %1289 = vmatpush.msra.mxu1 %v1274_v34 }
 0x12c   : > { %v742_v58 = vpop.f32.mrf.mxu2 }
 0x12d   : > { %v806_v59 = vadd.f32 %v742_v58, %v639_v52  ;;  %v874_v60 = vpop.f32.mrf.mxu3  ;;  %v2327_v19 = vmul.f32 %v1761_v43, %v1126_v7 }
 0x12e   : > { %v2317_v0 = vpop.f32.mrf.mxu1 }
 0x12f   : > { %v938_v1 = vadd.f32 %v874_v60, %v806_v59 }
 0x130   : > { %v1008_v2 = vpop.f32.mrf.mxu0 }
 0x131   : > { %v1070_v3 = vadd.f32 %v1006_v53, %v938_v1  ;;  %v2344_v53 = vmul.f32 %v1761_v43, %v1127_v18 }
 0x133   : > { %v1102_v8 = vadd.f32 %v2315_v57, %v1070_v3  ;;  %v1762_v3 = vld [vmem:[#allocation7 + $0x1] ss:$0 sm:$0xff] }
 0x134   : > { %v744_v11 = vpop.f32.mrf.mxu2 }
 0x135   : > { %v1130_v12 = vmax.f32 %v1102_v8, 0.0  ;;  %v807_v13 = vadd.f32 %v744_v11, %v641_v63  ;;  %v876_v14 = vpop.f32.mrf.mxu3  ;;  %v1646_v8 = vld [vmem:[%s2112_s10 + $0x80] sm:$0xff]  ;;  %v1101_v11 = vadd.f32 %v2315_v57, %v2301_v54 }
 0x136   : > { %v2322_v17 = vpop.f32.mrf.mxu1 }
 0x137   : > { %v2330_v22 = vmul.f32 %v1763_v10, %v1130_v12  ;;  %v939_v24 = vadd.f32 %v876_v14, %v807_v13  ;;  %v1129_v54 = vmax.f32 %v1101_v11, 0.0 }
 0x138   : > { %v1011_v26 = vpop.f32.mrf.mxu0 }
 0x139   : > { %v1238_v48 = vmax.f32 %v2327_v19, %v2330_v22  ;;  %v1071_v5 = vadd.f32 %v1008_v2, %v939_v24  ;;  %1545 = vmatmul.msk.bf16.gmra.mxu1 %vm477_vm0, %v2162_v20  ;;  %1569 = vmatmul.msk.bf16.gmra.mxu2 %vm477_vm0, %v2162_v20  ;;  %v1100_v20 = vadd.f32 %v2315_v57, %v1068_v38 }
 0x13a   : > { %1595 = vmatmul.msk.bf16.gmra.mxu3 %vm477_vm0, %v2175_v23 }
 0x13b   : > { %1621 = vmatmul.msk.bf16.gmra.mxu0 %vm477_vm0, %v2325_v9  ;;  %v1103_v41 = vadd.f32 %v2315_v57, %v1071_v5  ;;  %v1128_v2 = vmax.f32 %v1100_v20, 0.0  ;;  %v649_v5 = vadd.f32 %v2299_v47, %v2205_v25  ;;  %v1765_v25 = vld [vmem:[#allocation7 + $0x4] ss:$0 sm:$0xff] }
 0x13c   : > { %v747_v42 = vpop.f32.mrf.mxu2 }
 0x13d   : > { %v1131_v46 = vmax.f32 %v1103_v41, 0.0  ;;  %v808_v4 = vadd.f32 %v747_v42, %v2287_v15  ;;  %v879_v51 = vpop.f32.mrf.mxu3 }
 0x13e   : > { %v2349_v60 = vpop.f32.mrf.mxu1 }
 0x13f   : > { %v2347_v52 = vmul.f32 %v1763_v10, %v1131_v46  ;;  %v940_v58 = vadd.f32 %v879_v51, %v808_v4  ;;  %v2356_v10 = vmul.f32 %v1762_v3, %v1128_v2  ;;  %v1213_v46 = vmul.f32 %v1762_v3, %v1129_v54 }
 0x140   : > { %v1013_v59 = vpop.f32.mrf.mxu0 }
 0x141   : > { %v1251_v16 = vmax.f32 %v2344_v53, %v2347_v52  ;;  %v1072_v1 = vadd.f32 %v1011_v26, %v940_v58  ;;  %v1273_v26 = vld [vmem:[#allocation8 + $0x48] sm:$0xff] }
 0x142   : > { %1290 = vmatpush.msra.mxu1 %v1273_v26 }
 0x143   : > { %v1104_v15 = vadd.f32 %v2315_v57, %v1072_v1  ;;  %v651_v1 = vadd.f32 %v2317_v0, %v2217_v29  ;;  %v1272_v29 = vld [vmem:[#allocation8 + $0x40] sm:$0xff]  ;;  %v654_v0 = vadd.f32 %v2322_v17, %v2223_v33  ;;  %v656_v33 = vadd.f32 %v2349_v60, %v2237_v37 }
 0x144   : > { %v749_v7 = vpop.f32.mrf.mxu2  ;;  %1291 = vmatpush.msra.mxu1 %v1272_v29 }
 0x145   : > { %v1132_v43 = vmax.f32 %v1104_v15, 0.0  ;;  %v809_v63 = vadd.f32 %v749_v7, %v2297_v30  ;;  %v881_v38 = vpop.f32.mrf.mxu3 }
 0x146   : > { %v2366_v30 = vpop.f32.mrf.mxu1 }
 0x147   : > { %v2360_v12 = vmul.f32 %v1764_v6, %v1132_v43  ;;  %v941_v13 = vadd.f32 %v881_v38, %v809_v63  ;;  %v1647_v38 = vld [vmem:[%s2112_s10 + $0x88] sm:$0xff]  ;;  %v659_v37 = vadd.f32 %v2366_v30, %v2213_v27  ;;  %v1767_v27 = vld [vmem:[#allocation7 + $0x6] ss:$0 sm:$0xff] }
 0x148   : > { %v1016_v14 = vpop.f32.mrf.mxu0 }
 0x149   : > { %v1239_v21 = vmax.f32 %v2356_v10, %v2360_v12  ;;  %v1073_v24 = vadd.f32 %v1013_v59, %v941_v13  ;;  %1570 = vmatmul.msk.bf16.gmra.mxu2 %vm477_vm0, %v2175_v23  ;;  %v1270_v12 = vld [vmem:[#allocation8 + $0x30] sm:$0xff] }
 0x14a   : > { %1596 = vmatmul.msk.bf16.gmra.mxu3 %vm477_vm0, %v2325_v9 }
 0x14b   : > { %1622 = vmatmul.msk.bf16.gmra.mxu0 %vm477_vm0, %v1646_v8  ;;  %v1105_v34 = vadd.f32 %v2315_v57, %v1073_v24 }
 0x14c   : > { %v752_v18 = vpop.f32.mrf.mxu2 }
 0x14d   : > { %v1133_v41 = vmax.f32 %v1105_v34, 0.0  ;;  %v810_v42 = vadd.f32 %v752_v18, %v649_v5  ;;  %v884_v23 = vpop.f32.mrf.mxu3 }
 0x14e   : > { %v660_v47 = vpop.f32.mrf.mxu1 }
 0x14f   : > { %v1217_v4 = vmul.f32 %v1764_v6, %v1133_v41  ;;  %v942_v51 = vadd.f32 %v884_v23, %v810_v42  ;;  %v1766_v41 = vld [vmem:[#allocation7 + $0x5] ss:$0 sm:$0xff] }
 0x150   : > { %v1018_v20 = vpop.f32.mrf.mxu0 }
 0x151   : > { %v1252_v58 = vmax.f32 %v1213_v46, %v1217_v4  ;;  %v1074_v59 = vadd.f32 %v1016_v14, %v942_v51 }
 0x153   : > { %v1106_v2 = vadd.f32 %v2315_v57, %v1074_v59 }
 0x154   : > { %v754_v15 = vpop.f32.mrf.mxu2 }
 0x155   : > { %v1134_v7 = vmax.f32 %v1106_v2, 0.0  ;;  %v811_v43 = vadd.f32 %v754_v15, %v651_v1  ;;  %v886_v63 = vpop.f32.mrf.mxu3 }
 0x157   : > { %v1218_v11 = vmul.f32 %v1765_v25, %v1134_v7  ;;  %v943_v13 = vadd.f32 %v886_v63, %v811_v43 }
 0x158   : > { %v1021_v3 = vpop.f32.mrf.mxu0 }
 0x159   : > { %v2381_v6 = vmax.f32 %v1238_v48, %v1218_v11  ;;  %v1075_v14 = vadd.f32 %v1018_v20, %v943_v13  ;;  %1571 = vmatmul.msk.bf16.gmra.mxu2 %vm477_vm0, %v2325_v9  ;;  %v663_v48 = vpop.f32.mrf.mxu1  ;;  %v661_v13 = vadd.f32 %v660_v47, %v2219_v31 }
 0x15a   : > { %1597 = vmatmul.msk.bf16.gmra.mxu3 %vm477_vm0, %v1646_v8 }
 0x15b   : > { %1623 = vmatmul.msk.bf16.gmra.mxu0 %vm477_vm0, %v1647_v38  ;;  %v1107_v24 = vadd.f32 %v2315_v57, %v1075_v14 }
 0x15c   : > { %v757_v26 = vpop.f32.mrf.mxu2 }
 0x15d   : > { %v1135_v54 = vmax.f32 %v1107_v24, 0.0  ;;  %v812_v19 = vadd.f32 %v757_v26, %v654_v0  ;;  %v889_v22 = vpop.f32.mrf.mxu3 }
 0x15f   : > { %v1219_v5 = vmul.f32 %v1765_v25, %v1135_v54  ;;  %v944_v34 = vadd.f32 %v889_v22, %v812_v19  ;;  %v664_v22 = vadd.f32 %v663_v48, %v2233_v35  ;;  %v1768_v35 = vld [vmem:[#allocation7 + $0x7] ss:$0 sm:$0xff] }
 0x160   : > { %v1023_v18 = vpop.f32.mrf.mxu0 }
 0x161   : > { %v2393_v9 = vmax.f32 %v1251_v16, %v1219_v5  ;;  %v1076_v8 = vadd.f32 %v1021_v3, %v944_v34  ;;  %v665_v1 = vpop.f32.mrf.mxu1  ;;  %v1271_v16 = vld [vmem:[#allocation8 + $0x38] sm:$0xff] }
 0x162   : > { %1292 = vmatpush.msra.mxu1 %v1271_v16 }
 0x163   : > { %v1108_v17 = vadd.f32 %v2315_v57, %v1076_v8 }
 0x164   : > { %v759_v42 = vpop.f32.mrf.mxu2  ;;  %1293 = vmatpush.msra.mxu1 %v1270_v12 }
 0x165   : > { %v1136_v23 = vmax.f32 %v1108_v17, 0.0  ;;  %v813_v46 = vadd.f32 %v759_v42, %v656_v33  ;;  %v891_v4 = vpop.f32.mrf.mxu3 }
 0x167   : > { %v1220_v51 = vmul.f32 %v1766_v41, %v1136_v23  ;;  %v945_v20 = vadd.f32 %v891_v4, %v813_v46  ;;  %v1269_v46 = vld [vmem:[#allocation8 + $0x28] sm:$0xff] }
 0x168   : > { %v1026_v59 = vpop.f32.mrf.mxu0  ;;  %1294 = vmatpush.msra.mxu1 %v1269_v46 }
 0x169   : > { %v2401_v53 = vmax.f32 %v1239_v21, %v1220_v51  ;;  %v1077_v52 = vadd.f32 %v1023_v18, %v945_v20  ;;  %v668_v21 = vpop.f32.mrf.mxu1 }
 0x16b   : > { %v1109_v60 = vadd.f32 %v2315_v57, %v1077_v52 }
 0x16c   : > { %v762_v2 = vpop.f32.mrf.mxu2 }
 0x16d   : > { %v1137_v25 = vmax.f32 %v1109_v60, 0.0  ;;  %v814_v15 = vadd.f32 %v762_v2, %v659_v37  ;;  %v894_v7 = vpop.f32.mrf.mxu3 }
 0x16f   : > { %v1221_v43 = vmul.f32 %v1766_v41, %v1137_v25  ;;  %v946_v63 = vadd.f32 %v894_v7, %v814_v15  ;;  %v669_v25 = vadd.f32 %v668_v21, %v2253_v44 }
 0x170   : > { %v1028_v38 = vpop.f32.mrf.mxu0 }
 0x171   : > { %v2406_v11 = vmax.f32 %v1252_v58, %v1221_v43  ;;  %v1078_v10 = vadd.f32 %v1026_v59, %v946_v63  ;;  %v670_v34 = vpop.f32.mrf.mxu1 }
 0x172   : > { %v671_v44 = vadd.f32 %v670_v34, %v2259_v49 }
 0x173   : > { %v1110_v3 = vadd.f32 %v2315_v57, %v1078_v10 }
 0x174   : > { %v764_v30 = vpop.f32.mrf.mxu2 }
 0x175   : > { %v1138_v14 = vmax.f32 %v1110_v3, 0.0  ;;  %v815_v29 = vadd.f32 %v764_v30, %v661_v13  ;;  %v896_v0 = vpop.f32.mrf.mxu3  ;;  %v1769_v30 = vld [vmem:[#allocation7 + $0x8] ss:$0 sm:$0xff] }
 0x177   : > { %v1222_v24 = vmul.f32 %v1767_v27, %v1138_v14  ;;  %v947_v26 = vadd.f32 %v896_v0, %v815_v29 }
 0x178   : > { %v1031_v54 = vpop.f32.mrf.mxu0 }
 0x179   : > { %v1242_v19 = vmax.f32 %v2381_v6, %v1222_v24  ;;  %v1079_v58 = vadd.f32 %v1028_v38, %v947_v26  ;;  %v666_v6 = vadd.f32 %v665_v1, %v2239_v39  ;;  %v2416_v52 = vpop.f32.mrf.mxu1 }
 0x17b   : > { %v1111_v5 = vadd.f32 %v2315_v57, %v1079_v58 }
 0x17c   : > { %v767_v18 = vpop.f32.mrf.mxu2 }
 0x17d   : > { %v1139_v31 = vmax.f32 %v1111_v5, 0.0  ;;  %v816_v47 = vadd.f32 %v767_v18, %v664_v22  ;;  %v899_v8 = vpop.f32.mrf.mxu3 }
 0x17f   : > { %v1223_v33 = vmul.f32 %v1767_v27, %v1139_v31  ;;  %v948_v17 = vadd.f32 %v899_v8, %v816_v47  ;;  %v1268_v27 = vld [vmem:[#allocation8 + $0x20] sm:$0xff] }
 0x180   : > { %v1033_v41 = vpop.f32.mrf.mxu0  ;;  %1295 = vmatpush.msra.mxu1 %v1268_v27 }
 0x181   : > { %v1255_v42 = vmax.f32 %v2393_v9, %v1223_v33  ;;  %v1080_v23 = vadd.f32 %v1031_v54, %v948_v17  ;;  %v2426_v12 = vpop.f32.mrf.mxu1  ;;  %v1267_v17 = vld [vmem:[#allocation8 + $0x18] sm:$0xff] }
 0x182   : > { %1296 = vmatpush.msra.mxu1 %v1267_v17 }
 0x183   : > { %v1112_v4 = vadd.f32 %v2315_v57, %v1080_v23 }
 0x184   : > { %v769_v48 = vpop.f32.mrf.mxu2 }
 0x185   : > { %v1140_v51 = vmax.f32 %v1112_v4, 0.0  ;;  %v817_v20 = vadd.f32 %v769_v48, %v666_v6  ;;  %v901_v59 = vpop.f32.mrf.mxu3 }
 0x187   : > { %v2418_v16 = vmul.f32 %v1768_v35, %v1140_v51  ;;  %v949_v37 = vadd.f32 %v901_v59, %v817_v20 }
 0x188   : > { %v1036_v60 = vpop.f32.mrf.mxu0 }
 0x189   : > { %v1243_v9 = vmax.f32 %v2401_v53, %v2418_v16  ;;  %v1081_v2 = vadd.f32 %v1033_v41, %v949_v37  ;;  %v678_v18 = vpop.f32.mrf.mxu1 }
 0x18a   : > { %v679_v27 = vadd.f32 %v678_v18, %v2215_v28 }
 0x18b   : > { %v1113_v39 = vadd.f32 %v2315_v57, %v1081_v2 }
 0x18c   : > { %v772_v1 = vpop.f32.mrf.mxu2 }
 0x18d   : > { %v1141_v15 = vmax.f32 %v1113_v39, 0.0  ;;  %v818_v7 = vadd.f32 %v772_v1, %v669_v25  ;;  %v904_v43 = vpop.f32.mrf.mxu3  ;;  %v1265_v25 = vld [vmem:[#allocation8 + $0x8] sm:$0xff] }
 0x18f   : > { %v2424_v63 = vmul.f32 %v1768_v35, %v1141_v15  ;;  %v950_v38 = vadd.f32 %v904_v43, %v818_v7 }
 0x190   : > { %v1038_v10 = vpop.f32.mrf.mxu0 }
 0x191   : > { %v1256_v13 = vmax.f32 %v2406_v11, %v2424_v63  ;;  %v1082_v3 = vadd.f32 %v1036_v60, %v950_v38  ;;  %v680_v23 = vpop.f32.mrf.mxu1  ;;  %v674_v38 = vadd.f32 %v2416_v52, %v2271_v55  ;;  %v676_v55 = vadd.f32 %v2426_v12, %v2275_v61 }
 0x192   : > { %v681_v28 = vadd.f32 %v680_v23, %v2221_v32 }
 0x193   : > { %v1114_v21 = vadd.f32 %v2315_v57, %v1082_v3  ;;  %v1264_v3 = vld [vmem:[#allocation8] sm:$0xff] }
 0x194   : > { %v774_v14 = vpop.f32.mrf.mxu2 }
 0x195   : > { %v1142_v29 = vmax.f32 %v1114_v21, 0.0  ;;  %v819_v0 = vadd.f32 %v774_v14, %v671_v44  ;;  %v906_v24 = vpop.f32.mrf.mxu3 }
 0x197   : > { %v1226_v26 = vmul.f32 %v1769_v30, %v1142_v29  ;;  %v951_v54 = vadd.f32 %v906_v24, %v819_v0 }
 0x198   : > { %v1041_v58 = vpop.f32.mrf.mxu0 }
 0x199   : > { %v2432_v22 = vmax.f32 %v1242_v19, %v1226_v26  ;;  %v1083_v5 = vadd.f32 %v1038_v10, %v951_v54  ;;  %v1266_v19 = vld [vmem:[#allocation8 + $0x10] sm:$0xff]  ;;  %v683_v51 = vpop.f32.mrf.mxu1 }
 0x19a   : > { %1297 = vmatpush.msra.mxu1 %v1266_v19  ;;  %v684_v14 = vadd.f32 %v683_v51, %v2235_v36 }
 0x19b   : > { %v1115_v31 = vadd.f32 %v2315_v57, %v1083_v5 }
 0x19c   : > { %v777_v47 = vpop.f32.mrf.mxu2  ;;  %1298 = vmatpush.msra.mxu1 %v1265_v25 }
 0x19d   : > { %v1143_v8 = vmax.f32 %v1115_v31, 0.0  ;;  %v909_v33 = vpop.f32.mrf.mxu3  ;;  %v820_v44 = vadd.f32 %v777_v47, %v674_v38 }
 0x19e   : > { %1299 = vmatpush.msra.mxu1 %v1264_v3 }
 0x19f   : > { %v1227_v49 = vmul.f32 %v1769_v30, %v1143_v8  ;;  %v952_v54 = vadd.f32 %v909_v33, %v820_v44 }
 0x1a0   : > { %v2435_v34 = vpop.f32.mrf.mxu0 }
 0x1a1   : > { %v2437_v41 = vmax.f32 %v1255_v42, %v1227_v49  ;;  %v685_v2 = vpop.f32.mrf.mxu1  ;;  %v1084_v18 = vadd.f32 %v1041_v58, %v952_v54 }
 0x1a2   : > { %v686_v36 = vadd.f32 %v685_v2, %v2241_v40 }
 0x1a3   : > { %v1116_v61 = vadd.f32 %v2315_v57, %v1084_v18 }
 0x1a4   : > { %v779_v46 = vpop.f32.mrf.mxu2 }
 0x1a5   : > { %v911_v6 = vpop.f32.mrf.mxu3  ;;  %v821_v47 = vadd.f32 %v779_v46, %v676_v55 }
 0x1a7   : > { %v953_v12 = vadd.f32 %v911_v6, %v821_v47 }
 0x1a8   : > { %v1046_v4 = vpop.f32.mrf.mxu0 }
 0x1a9   : > { %v688_v15 = vpop.f32.mrf.mxu1 }
 0x1aa   : > { %v689_v24 = vadd.f32 %v688_v15, %v2255_v45 }
 0x1ac   : > { %v782_v35 = vpop.f32.mrf.mxu2 }
 0x1ad   : > { %v914_v48 = vpop.f32.mrf.mxu3  ;;  %v822_v0 = vadd.f32 %v782_v35, %v679_v27 }
 0x1af   : > { %v954_v52 = vadd.f32 %v914_v48, %v822_v0 }
 0x1b0   : > { %v2439_v20 = vpop.f32.mrf.mxu0 }
 0x1b1   : > { %v690_v21 = vpop.f32.mrf.mxu1  ;;  %v1086_v35 = vadd.f32 %v1046_v4, %v954_v52  ;;  %v1144_v4 = vmax.f32 %v1116_v61, 0.0 }
 0x1b2   : > { %v691_v33 = vadd.f32 %v690_v21, %v2261_v50 }
 0x1b3   : > { %v1118_v58 = vadd.f32 %v2315_v57, %v1086_v35 }
 0x1b4   : > { %v784_v59 = vpop.f32.mrf.mxu2 }
 0x1b5   : > { %v916_v37 = vpop.f32.mrf.mxu3  ;;  %v823_v45 = vadd.f32 %v784_v59, %v681_v28  ;;  %v1770_v59 = vld [vmem:[#allocation7 + $0x9] ss:$0 sm:$0xff]  ;;  %v1146_v38 = vmax.f32 %v1118_v58, 0.0 }
 0x1b7   : > { %v955_v23 = vadd.f32 %v916_v37, %v823_v45 }
 0x1b8   : > { %v1051_v60 = vpop.f32.mrf.mxu0 }
 0x1b9   : > { %v693_v51 = vpop.f32.mrf.mxu1  ;;  %v1087_v3 = vadd.f32 %v2439_v20, %v955_v23 }
 0x1ba   : > { %v694_v46 = vadd.f32 %v693_v51, %v2273_v56  ;;  %v1772_v56 = vld [vmem:[#allocation7 + $0xb] ss:$0 sm:$0xff] }
 0x1bb   : > { %v1119_v54 = vadd.f32 %v2315_v57, %v1087_v3 }
 0x1bc   : > { %v787_v39 = vpop.f32.mrf.mxu2 }
 0x1bd   : > { %v919_v42 = vpop.f32.mrf.mxu3  ;;  %v824_v26 = vadd.f32 %v787_v39, %v684_v14 }
 0x1bf   : > { %v956_v31 = vadd.f32 %v919_v42, %v824_v26  ;;  %v1085_v42 = vadd.f32 %v2435_v34, %v953_v12 }
 0x1c0   : > { %v1053_v1 = vpop.f32.mrf.mxu0 }
 0x1c1   : > { %v1088_v25 = vadd.f32 %v1051_v60, %v956_v31  ;;  %v695_v14 = vpop.f32.mrf.mxu1 }
 0x1c2   : > { %v696_v55 = vadd.f32 %v695_v14, %v2277_v62 }
 0x1c3   : > { %v1120_v40 = vadd.f32 %v2315_v57, %v1088_v25 }
 0x1c4   : > { %v789_v7 = vpop.f32.mrf.mxu2 }
 0x1c5   : > { %v921_v43 = vpop.f32.mrf.mxu3  ;;  %v825_v39 = vadd.f32 %v789_v7, %v686_v36  ;;  %v1148_v27 = vmax.f32 %v1120_v40, 0.0 }
 0x1c7   : > { %v957_v2 = vadd.f32 %v921_v43, %v825_v39  ;;  %v1228_v43 = vmul.f32 %v1770_v59, %v1144_v4 }
 0x1c8   : > { %v1056_v10 = vpop.f32.mrf.mxu0 }
 0x1c9   : > { %v1089_v44 = vadd.f32 %v1053_v1, %v957_v2  ;;  %v1774_v1 = vld [vmem:[#allocation7 + $0xd] ss:$0 sm:$0xff]  ;;  %v1245_v31 = vmax.f32 %v1243_v9, %v1228_v43 }
 0x1cb   : > { %v1121_v20 = vadd.f32 %v2315_v57, %v1089_v44 }
 0x1cc   : > { %v792_v30 = vpop.f32.mrf.mxu2 }
 0x1cd   : > { %v924_v29 = vpop.f32.mrf.mxu3  ;;  %v826_v5 = vadd.f32 %v792_v30, %v689_v24  ;;  %v1117_v30 = vadd.f32 %v2315_v57, %v1085_v42  ;;  %v1149_v45 = vmax.f32 %v1121_v20, 0.0 }
 0x1cf   : > { %v958_v17 = vadd.f32 %v924_v29, %v826_v5  ;;  %v1773_v29 = vld [vmem:[#allocation7 + $0xc] ss:$0 sm:$0xff]  ;;  %v1232_v5 = vmul.f32 %v1772_v56, %v1148_v27  ;;  %v1145_v28 = vmax.f32 %v1117_v30, 0.0 }
 0x1d0   : > { %v1058_v8 = vpop.f32.mrf.mxu0 }
 0x1d1   : > { %v1090_v48 = vadd.f32 %v1056_v10, %v958_v17  ;;  %v1771_v10 = vld [vmem:[#allocation7 + $0xa] ss:$0 sm:$0xff]  ;;  %v1247_v35 = vmax.f32 %v1245_v31, %v1232_v5  ;;  %v1229_v25 = vmul.f32 %v1770_v59, %v1145_v28 }
 0x1d2   : > { %v1230_v26 = vmul.f32 %v1771_v10, %v1146_v38 }
 0x1d3   : > { %v1122_v60 = vadd.f32 %v2315_v57, %v1090_v48  ;;  %v1233_v48 = vmul.f32 %v1772_v56, %v1149_v45 }
 0x1d4   : > { %v794_v49 = vpop.f32.mrf.mxu2  ;;  %v1246_v17 = vmax.f32 %v2432_v22, %v1230_v26  ;;  %v1258_v22 = vmax.f32 %v1256_v13, %v1229_v25 }
 0x1d5   : > { %v926_v19 = vpop.f32.mrf.mxu3  ;;  %v827_v32 = vadd.f32 %v794_v49, %v691_v33  ;;  %v1150_v34 = vmax.f32 %v1122_v60, 0.0 }
 0x1d6   : > { %v1260_v4 = vmax.f32 %v1258_v22, %v1233_v48 }
 0x1d7   : > { %v959_v15 = vadd.f32 %v926_v19, %v827_v32  ;;  %v1234_v47 = vmul.f32 %v1773_v29, %v1150_v34  ;;  %v1147_v19 = vmax.f32 %v1119_v54, 0.0 }
 0x1d8   : > { %v1061_v37 = vpop.f32.mrf.mxu0 }
 0x1d9   : > { %v1091_v0 = vadd.f32 %v1058_v8, %v959_v15  ;;  %v1248_v61 = vmax.f32 %v1246_v17, %v1234_v47  ;;  %v1231_v12 = vmul.f32 %v1771_v10, %v1147_v19 }
 0x1db   : > { %v1123_v8 = vadd.f32 %v2315_v57, %v1091_v0  ;;  %v1259_v2 = vmax.f32 %v2437_v41, %v1231_v12 }
 0x1dc   : > { %v797_v50 = vpop.f32.mrf.mxu2 }
 0x1dd   : > { %v828_v7 = vadd.f32 %v797_v50, %v694_v46  ;;  %v929_v6 = vpop.f32.mrf.mxu3  ;;  %v1151_v53 = vmax.f32 %v1123_v8, 0.0 }
 0x1df   : > { %v960_v21 = vadd.f32 %v929_v6, %v828_v7  ;;  %v1235_v23 = vmul.f32 %v1773_v29, %v1151_v53 }
 0x1e0   : > { %v1063_v39 = vpop.f32.mrf.mxu0 }
 0x1e1   : > { %v1092_v24 = vadd.f32 %v1061_v37, %v960_v21  ;;  %v1261_v59 = vmax.f32 %v1259_v2, %v1235_v23 }
 0x1e3   : > { %v1124_v52 = vadd.f32 %v2315_v57, %v1092_v24 }
 0x1e4   : > { %v799_v18 = vpop.f32.mrf.mxu2 }
 0x1e5   : > { %v1152_v49 = vmax.f32 %v1124_v52, 0.0  ;;  %v829_v36 = vadd.f32 %v799_v18, %v696_v55  ;;  %v931_v62 = vpop.f32.mrf.mxu3 }
 0x1e7   : > { %v1236_v51 = vmul.f32 %v1774_v1, %v1152_v49  ;;  %v961_v33 = vadd.f32 %v931_v62, %v829_v36 }
 0x1e9   : > { %v1249_v16 = vmax.f32 %v1247_v35, %v1236_v51  ;;  %v1093_v9 = vadd.f32 %v1063_v39, %v961_v33 }
 0x1eb   : > { %v1250_v32 = vmax.f32 %v1248_v61, %v1249_v16  ;;  %v1125_v58 = vadd.f32 %v2315_v57, %v1093_v9  ;;  %v1775_v57 = vld [vmem:[%s2515_s5] ss:$0 sm:$0xff] }
 0x1ed   : > { %v1153_v46 = vmax.f32 %v1125_v58, 0.0  ;;  %1300 = vmatmul.f32.vlgmr.msra.gmra.mxu1 %v1250_v32 }
 0x1ef   : > { %v1237_v40 = vmul.f32 %v1774_v1, %v1153_v46 }
 0x1f1   : > { %v1262_v42 = vmax.f32 %v1260_v4, %v1237_v40 }
 0x1f3   : > { %v1263_v50 = vmax.f32 %v1261_v59, %v1262_v42 }
 0x1f5   : > { %1303 = vmatmul.f32.gmra.mxu1 %v1263_v50 }
 0x26a   : > { %v1301_v11 = vpop.f32.mrf.mxu1 }
 0x26b   : > { %v1302_v63 = vadd.f32 %v1775_v57, %v1301_v11 }
 0x26d   : > { %1307 = vst [vmem:[%s346_s13] sm:$0xff] %v1302_v63 }
 0x272   : > { %v1304_v13 = vpop.f32.mrf.mxu1 }
 0x273   : > { %v1305_v41 = vadd.f32 %v1775_v57, %v1304_v13 }
 0x275   : > { %1308 = vst [vmem:[%s346_s13 + $0x8] sm:$0xff] %v1305_v41 }
 0x276   : > { %1893 = shalt.err (!%p1890_p9)
}
 0x277   : > { %s1957_s20 = smov 128   ;;  %s1958_s7 = smov 8  }
 0x278   : > { %1688 = dma.vmem_to_hbm [thread:$0]  (%p2046_p11), %s1323_s15, 256, %s1325_s18, %s1310_s19, %s1957_s20, %s1957_s20, %s1958_s7  }
 0x279 PF: > { %s1339_s11 = sand.u32 1, %s1928_s21   ;;  %p1701_p10 = pnand %p1432_p2, %p2050_p12 }
 0x27a   : > { %s1340_s14 = scalar_lea.sflag [#allocation4], %s1339_s11 }
 0x27b   : > { %p1702_p13 = pneg %p1701_p10 }
 0x27d   : > { %1923 = dma.done.wait (%p1702_p13), %s1340_s14, 256  }
 0x27e   : > { %1925 = vsyncadd (%p1702_p13), %s1340_s14, 4294967040  ;;  %s2534_s24 = sld [smem:[#allocation18_spill]]  ;;  %s2536_s21 = smov %s1932_s22 }
 0x27f   : > { %s2535_s1 = sld [smem:[#allocation19_spill]]  ;;  %s2537_s22 = smov %s1936_s23 }
 0x284   : > { %p21_p1 = scmp.ge.s32.totalorder %s2534_s24, 4  }
 0x285   : > { %s2538_s23 = smov %s2535_s1 }
 0x286   :  { %23 = sbr.rel (!%p21_p1) target bundleno = 10 (0xa), region = 110 }
 0x28b   :  { %1346 = vsyncpa [#allocation3], 1 }
 0x28c   :  { %1348 = vsyncpa [#allocation3 + $0x1], 1 }
 0x28d   :  { %1349 = vsyncpa [#allocation6], 1 }
 0x28e   :  { %1350 = vsyncpa [#allocation9], 1 }
 0x28f   :  { %1351 = vsyncpa [#allocation4], 1 }
 0x290   :  { %1353 = vsyncpa [#allocation4 + $0x1], 1 }

</bundles_post_ra>
